<compile_context>
chip_gen: v5e
topology: v5e:2x2
jax: 0.10.0
libtpu: 0.0.40
codegen_flags: <defaults>
</compile_context>

<pallas_src>
import functools

import jax
import jax.numpy as jnp
from jax.experimental import pallas as pl
from jax.experimental.pallas import tpu as pltpu


# ----------------------------------------------------------------------------
# Helpers / tile selection
# ----------------------------------------------------------------------------

_A_TILE_BYTES = 2 * 1024 * 1024     # max single-block activation tile (bf16)
_W_TILE_BYTES = 4 * 1024 * 1024     # max per-buffer weight tile (bf16)
_VMEM_LIMIT = 32 * 1024 * 1024      # explicit scoped-VMEM budget (v7x-safe)


def _round_up(x, m):
    return (x + m - 1) // m * m


def _pick_div(d, prefs):
    """Largest preferred tile that divides d, else the full dimension."""
    for t in prefs:
        if d % t == 0:
            return t
    return d


def _pick_m(M):
    """(tile_m, padded_M) for the large-M matmul row dimension."""
    for t in (256, 128):
        if M % t == 0:
            return t, M
    Mp = _round_up(M, 128)
    return 128, Mp


def _pick_n(K, N):
    """Output-channel tile.

    Single full-extent N block for small layers (fewest grid steps); split
    into >= 2 lane-dense blocks when the weight slab is >= 1 MiB so both v7x
    TensorCores share the DMA, and shrink further only if the weight tile
    would exceed the per-buffer VMEM budget.
    """
    tn = N
    if N % 256 == 0 and K * N * 2 >= (1 << 20):
        tn = N // 2
    while tn >= 256 and K * tn * 2 > _W_TILE_BYTES and tn % 256 == 0:
        tn //= 2
    return tn


def _pick_rows(R):
    """(row_block, padded_R) for row-tiled elementwise kernels."""
    for t in (512, 256, 128):
        if R % t == 0:
            return t, R
    if R <= 2048:
        Rp = _round_up(R, 16)
        return Rp, Rp
    Rp = _round_up(R, 128)
    return 128, Rp


# ----------------------------------------------------------------------------
# Pallas kernels
# ----------------------------------------------------------------------------

def _matmul_bias_kernel(a_ref, w_ref, b_ref, o_ref, acc_ref, *, relu):
    """out = relu?(A @ W + bias); BN scale is pre-folded into W."""
    @pl.when(pl.program_id(2) == 0)
    def _():
        acc_ref[...] = jnp.zeros_like(acc_ref)

    acc_ref[...] += jnp.dot(a_ref[...], w_ref[...],
                            preferred_element_type=jnp.float32)

    @pl.when(pl.program_id(2) == pl.num_programs(2) - 1)
    def _():
        y = acc_ref[...] + b_ref[...]
        if relu:
            y = jnp.maximum(y, 0.0)
        o_ref[...] = y.astype(o_ref.dtype)


def _matmul_bias_res_kernel(a_ref, w_ref, b_ref, r_ref, o_ref, acc_ref):
    """out = relu(A @ W + bias + residual)."""
    @pl.when(pl.program_id(2) == 0)
    def _():
        acc_ref[...] = jnp.zeros_like(acc_ref)

    acc_ref[...] += jnp.dot(a_ref[...], w_ref[...],
                            preferred_element_type=jnp.float32)

    @pl.when(pl.program_id(2) == pl.num_programs(2) - 1)
    def _():
        y = acc_ref[...] + b_ref[...] + r_ref[...].astype(jnp.float32)
        o_ref[...] = jnp.maximum(y, 0.0).astype(o_ref.dtype)


def _maxpool_kernel(x_ref, o_ref):
    # x block: (9, rows, lanes) -> elementwise max over the 9 pooling taps.
    o_ref[...] = jnp.max(x_ref[...], axis=0)


def _avgpool_kernel(x_ref, o_ref):
    # x: (N, HW, C) -> mean over HW in f32.
    o_ref[...] = jnp.mean(x_ref[...].astype(jnp.float32), axis=1)


# ----------------------------------------------------------------------------
# Fused matmul wrapper (conv + folded-BN (+ReLU) (+residual add))
# ----------------------------------------------------------------------------

def fused_matmul(a, w, bias, *, residual=None, relu=True,
                 out_dtype=jnp.bfloat16):
    """a:(M,K) bf16, w:(Kw,N) bf16 (scale folded, K pre-padded), bias:(N,) f32."""
    M, K = a.shape
    Kw, N = w.shape
    if K < Kw:                         # weight K was pre-padded (stem only)
        a = jnp.pad(a, ((0, 0), (0, Kw - K)))
        K = Kw

    # --- tile selection -----------------------------------------------------
    small_m = M <= 512 and M * K * 2 <= _A_TILE_BYTES
    if small_m:
        # Whole M and whole K in one block: 1 reduction step, 1-2 N steps.
        tm, Mp, tk = M, M, K
    else:
        tm, Mp = _pick_m(M)
        tk = _pick_div(K, (2304, 2048, 1536, 1152, 1024,
                           768, 576, 512, 384, 256, 128))
    tn = _pick_n(K, N)

    if Mp > M:                         # large-M fallback only (never at 32x32)
        a = jnp.pad(a, ((0, Mp - M), (0, 0)))
        if residual is not None:
            residual = jnp.pad(residual, ((0, Mp - M), (0, 0)))

    bias2 = bias.reshape(1, N).astype(jnp.float32)

    in_specs = [
        pl.BlockSpec((tm, tk), lambda i, j, k: (i, k)),
        pl.BlockSpec((tk, tn), lambda i, j, k: (k, j)),
        pl.BlockSpec((1, tn), lambda i, j, k: (0, j)),
    ]
    args = [a, w, bias2]
    if residual is not None:
        in_specs.append(pl.BlockSpec((tm, tn), lambda i, j, k: (i, j)))
        args.append(residual)
        kernel = _matmul_bias_res_kernel
    else:
        kernel = functools.partial(_matmul_bias_kernel, relu=relu)

    out = pl.pallas_call(
        kernel,
        out_shape=jax.ShapeDtypeStruct((Mp, N), out_dtype),
        grid_spec=pltpu.PrefetchScalarGridSpec(
            num_scalar_prefetch=0,
            grid=(Mp // tm, N // tn, K // tk),
            in_specs=in_specs,
            out_specs=pl.BlockSpec((tm, tn), lambda i, j, k: (i, j)),
            scratch_shapes=[pltpu.VMEM((tm, tn), jnp.float32)],
        ),
        compiler_params=pltpu.CompilerParams(
            dimension_semantics=("parallel", "parallel", "arbitrary"),
            vmem_limit_bytes=_VMEM_LIMIT),
    )(*args)
    return out[:M] if Mp > M else out


# ----------------------------------------------------------------------------
# Plain-JAX layout glue
# ----------------------------------------------------------------------------

def _im2col(x, kh, kw, stride, pad):
    """x: NHWC -> (N*Ho*Wo, kh*kw*C) patches, feature order (kh, kw, C)."""
    N, H, W, C = x.shape
    Ho = (H + 2 * pad - kh) // stride + 1
    Wo = (W + 2 * pad - kw) // stride + 1
    if kh == 1 and kw == 1 and pad == 0:
        if stride != 1:
            x = x[:, ::stride, ::stride, :]
        return x.reshape(N * Ho * Wo, C), Ho, Wo
    if pad > 0:
        x = jnp.pad(x, ((0, 0), (pad, pad), (pad, pad), (0, 0)))
    cols = [x[:, dy:dy + stride * Ho:stride, dx:dx + stride * Wo:stride, :]
            for dy in range(kh) for dx in range(kw)]
    patches = jnp.concatenate(cols, axis=-1)
    return patches.reshape(N * Ho * Wo, kh * kw * C), Ho, Wo


def conv_bn(x, layer, kh, kw, stride, pad, *, relu=True, residual=None,
            out_dtype=jnp.bfloat16):
    """x: NHWC bf16. Fused conv + folded-BN (+ReLU) (+residual add+ReLU)."""
    N = x.shape[0]
    patches, Ho, Wo = _im2col(x, kh, kw, stride, pad)
    cout = layer["w"].shape[1]
    out = fused_matmul(patches, layer["w"], layer["bias"],
                       residual=residual, relu=relu, out_dtype=out_dtype)
    return out.reshape(N, Ho, Wo, cout)


def maxpool_3x3_s2_p1(x):
    N, H, W, C = x.shape
    k, s, pad = 3, 2, 1
    xp = jnp.pad(x, ((0, 0), (pad, pad), (pad, pad), (0, 0)),
                 constant_values=-jnp.inf)
    Ho = (H + 2 * pad - k) // s + 1
    Wo = (W + 2 * pad - k) // s + 1
    slabs = [xp[:, dy:dy + s * Ho:s, dx:dx + s * Wo:s, :]
             for dy in range(k) for dx in range(k)]
    M = N * Ho * Wo
    stacked = jnp.stack(slabs, axis=0).reshape(9, M, C)

    # Lane-dense fold: present a 128-wide last dim to the kernel when possible.
    if (M * C) % 128 == 0:
        R, L = (M * C) // 128, 128
    else:
        R, L = M, C
    stacked = stacked.reshape(9, R, L)
    br, Rp = _pick_rows(R)
    if Rp > R:
        stacked = jnp.pad(stacked, ((0, 0), (0, Rp - R), (0, 0)))

    out = pl.pallas_call(
        _maxpool_kernel,
        out_shape=jax.ShapeDtypeStruct((Rp, L), x.dtype),
        grid=(Rp // br,),
        in_specs=[pl.BlockSpec((9, br, L), lambda i: (0, i, 0))],
        out_specs=pl.BlockSpec((br, L), lambda i: (i, 0)),
        compiler_params=pltpu.CompilerParams(
            dimension_semantics=("parallel",)),
    )(stacked)
    return out[:R].reshape(N, Ho, Wo, C)


def global_avg_pool(x):
    """x: (N, HW, C) bf16 -> (N, C) f32."""
    N, HW, C = x.shape
    return pl.pallas_call(
        _avgpool_kernel,
        out_shape=jax.ShapeDtypeStruct((N, C), jnp.float32),
        grid=(1,),
        in_specs=[pl.BlockSpec((N, HW, C), lambda i: (0, 0, 0))],
        out_specs=pl.BlockSpec((N, C), lambda i: (0, 0)),
    )(x)


# ----------------------------------------------------------------------------
# Network pieces (jitted at block granularity: dedupes compiles across the
# 23 identical stage-3 blocks while removing per-op dispatch overhead).
# ----------------------------------------------------------------------------

@jax.jit
def stem_forward(stem_p, x_nchw):
    x = jnp.transpose(x_nchw, (0, 2, 3, 1)).astype(jnp.bfloat16)  # NCHW->NHWC
    x = conv_bn(x, stem_p, 7, 7, 2, 3, relu=True)
    return maxpool_3x3_s2_p1(x)


@functools.partial(jax.jit, static_argnums=(2, 3))
def bottleneck_forward(p, x, stride, has_down):
    y = conv_bn(x, p["conv1"], 1, 1, 1, 0, relu=True)
    y = conv_bn(y, p["conv2"], 3, 3, stride, 1, relu=True)
    Nb, Ho, Wo, cmid = y.shape
    M = Nb * Ho * Wo
    if has_down:
        # conv3+BN3 and downsample conv+BN fused into ONE matmul:
        # A = [y | x_strided] along K, W = [W3*s3 | Wd*sd] (concat at prep),
        # bias = b3 + bd; epilogue applies ReLU.
        xs = x[:, ::stride, ::stride, :] if stride != 1 else x
        a = jnp.concatenate([y.reshape(M, cmid),
                             xs.reshape(M, xs.shape[-1])], axis=1)
        layer = p["conv3down"]
        out = fused_matmul(a, layer["w"], layer["bias"], relu=True)
    else:
        # conv3 + BN3 + residual add + ReLU fused in one matmul epilogue.
        res2d = x.reshape(M, x.shape[-1])
        layer = p["conv3"]
        out = fused_matmul(y.reshape(M, cmid), layer["w"], layer["bias"],
                           residual=res2d, relu=True)
    return out.reshape(Nb, Ho, Wo, layer["w"].shape[1])


@functools.partial(jax.jit, static_argnums=(3,))
def head_forward(x, fc_w, fc_b, num_classes):
    N, H, W, C = x.shape
    pooled = global_avg_pool(x.reshape(N, H * W, C))          # (N, C) f32
    logits = fused_matmul(pooled.astype(jnp.bfloat16), fc_w, fc_b,
                          relu=False, out_dtype=jnp.float32)  # lane-dense (128)
    return logits[:, :num_classes]


def resnet101_forward(params, x_nchw, arch):
    x = stem_forward(params["stem"], x_nchw)
    for stage_p, stage_a in zip(params["layers"], arch):
        for blk_p, (stride, has_down) in zip(stage_p, stage_a):
            x = bottleneck_forward(blk_p, x, stride, has_down)
    return head_forward(x, params["fc_w"], params["fc_b"],
                        params["num_classes"])


# ----------------------------------------------------------------------------
# Parameter preparation (BN scale folded into bf16 weights, downsample conv
# concatenated into conv3, FC padded to 128 classes — all done ONCE offline)
# ----------------------------------------------------------------------------

def _fold_conv_bn(w, bn, eps=1e-5):
    kh, kw, cin, cout = w.shape
    K = kh * kw * cin
    scale = bn["gamma"] / jnp.sqrt(bn["var"] + eps)
    bias = bn["beta"] - bn["mean"] * scale
    # Fold BN scale into the weight (f32) before the bf16 cast.
    w2 = jnp.asarray(w, jnp.float32).reshape(K, cout) * scale[None, :]
    if K % 8 != 0:                         # only the 7x7x3 stem (K=147)
        w2 = jnp.pad(w2, ((0, _round_up(K, 128) - K), (0, 0)))
    return {"w": w2.astype(jnp.bfloat16), "bias": bias.astype(jnp.float32)}


def make_resnet101_params(key, num_classes=88):
    cnt = [0]

    def nkey():
        cnt[0] += 1
        return jax.random.fold_in(key, cnt[0])

    def conv_w(kh, kw, cin, cout):
        fan_in = kh * kw * cin
        return (jax.random.normal(nkey(), (kh, kw, cin, cout), jnp.float32)
                * jnp.sqrt(2.0 / fan_in))

    def bn_p(c):
        return {"gamma": jnp.ones((c,), jnp.float32),
                "beta": jnp.zeros((c,), jnp.float32),
                "mean": jnp.zeros((c,), jnp.float32),
                "var": jnp.ones((c,), jnp.float32)}

    params = {"stem": _fold_conv_bn(conv_w(7, 7, 3, 64), bn_p(64)),
              "layers": [], "num_classes": num_classes}
    arch = []
    expansion = 4
    in_ch = 64
    # ResNet-101: [3, 4, 23, 3] bottleneck blocks.
    for planes, n_blocks, stride in [(64, 3, 1), (128, 4, 2),
                                     (256, 23, 2), (512, 3, 2)]:
        blocks_p, blocks_a = [], []
        for b in range(n_blocks):
            s = stride if b == 0 else 1
            out_ch = planes * expansion
            has_down = (s != 1 or in_ch != out_ch)
            blk = {"conv1": _fold_conv_bn(conv_w(1, 1, in_ch, planes),
                                          bn_p(planes)),
                   "conv2": _fold_conv_bn(conv_w(3, 3, planes, planes),
                                          bn_p(planes))}
            conv3 = _fold_conv_bn(conv_w(1, 1, planes, out_ch), bn_p(out_ch))
            if has_down:
                down = _fold_conv_bn(conv_w(1, 1, in_ch, out_ch), bn_p(out_ch))
                blk["conv3down"] = {
                    "w": jnp.concatenate([conv3["w"], down["w"]], axis=0),
                    "bias": conv3["bias"] + down["bias"],
                }
            else:
                blk["conv3"] = conv3
            blocks_p.append(blk)
            blocks_a.append((s, has_down))
            in_ch = out_ch
        params["layers"].append(blocks_p)
        arch.append(tuple(blocks_a))

    # FC head, padded to 128 output lanes for lane-dense stores.
    ncls_pad = _round_up(num_classes, 128)
    fc_w = (jax.random.normal(nkey(), (512 * expansion, num_classes),
                              jnp.float32)
            * jnp.sqrt(1.0 / (512 * expansion)))
    fc_w = jnp.pad(fc_w, ((0, 0), (0, ncls_pad - num_classes)))
    params["fc_w"] = fc_w.astype(jnp.bfloat16)
    params["fc_b"] = jnp.zeros((ncls_pad,), jnp.float32)
    return params, tuple(arch)


# ----------------------------------------------------------------------------

if __name__ == "__main__":
    root = jax.random.PRNGKey(0)
    params, arch = make_resnet101_params(jax.random.fold_in(root, 1),
                                         num_classes=88)
    # Small input consistent with the module: NCHW, 3 input channels.
    x = jax.random.normal(jax.random.fold_in(root, 2), (2, 3, 32, 32),
                          jnp.float32)
    logits = resnet101_forward(params, x, arch)
    logits = jax.block_until_ready(logits)
    assert logits.shape == (2, 88), logits.shape
    assert bool(jnp.all(jnp.isfinite(logits)))
    print("KERNEL_OK")
</pallas_src>

<mosaic_0001>
module attributes {stable_mosaic.version = 11 : i64} {
  func.func @_matmul_bias_kernel(%arg0: i32, %arg1: i32, %arg2: i32, %arg3: memref<512x256xbf16, #tpu.memory_space<vmem>>, %arg4: memref<256x64xbf16, #tpu.memory_space<vmem>>, %arg5: memref<1x64xf32, #tpu.memory_space<vmem>>, %arg6: memref<512x64xbf16, #tpu.memory_space<vmem>>, %arg7: memref<512x64xf32, #tpu.memory_space<vmem>>) attributes {dimension_semantics = [#tpu.dimension_semantics<parallel>, #tpu.dimension_semantics<parallel>, #tpu.dimension_semantics<arbitrary>], iteration_bounds = array<i64: 1, 1, 1>, scalar_prefetch = 0 : i64, scratch_operands = 1 : i64, tpu.core_type = #tpu.core_type<tc>, window_params = [{transform_indices = @transform_0, window_bounds = array<i64: 512, 256>}, {transform_indices = @transform_1, window_bounds = array<i64: 256, 64>}, {transform_indices = @transform_2, window_bounds = array<i64: 1, 64>}, {transform_indices = @transform_3, window_bounds = array<i64: 512, 64>}]} {
    %c0_i32 = arith.constant 0 : i32
    %0 = arith.cmpi eq, %arg2, %c0_i32 : i32
    %1 = arith.extui %0 : i1 to i32
    %c0_i32_0 = arith.constant 0 : i32
    %2 = arith.cmpi ne, %1, %c0_i32_0 : i32
    scf.if %2 {
      %cst_10 = arith.constant 0.000000e+00 : f32
      %12 = vector.broadcast %cst_10 : f32 to vector<512x64xf32>
      %c0_11 = arith.constant 0 : index
      %c0_12 = arith.constant 0 : index
      %13 = vector.load %arg7[%c0_11, %c0_12] : memref<512x64xf32, #tpu.memory_space<vmem>>, vector<512x64xf32>
      tpu.vector_store %arg7[%c0_11, %c0_12], %12 {strides = array<i32>} : memref<512x64xf32, #tpu.memory_space<vmem>>, vector<512x64xf32>,
    } else {
    }
    %c0 = arith.constant 0 : index
    %c0_1 = arith.constant 0 : index
    %3 = vector.load %arg7[%c0, %c0_1] : memref<512x64xf32, #tpu.memory_space<vmem>>, vector<512x64xf32>
    %c0_2 = arith.constant 0 : index
    %c0_3 = arith.constant 0 : index
    %4 = vector.load %arg3[%c0_2, %c0_3] : memref<512x256xbf16, #tpu.memory_space<vmem>>, vector<512x256xbf16>
    %c0_4 = arith.constant 0 : index
    %c0_5 = arith.constant 0 : index
    %5 = vector.load %arg4[%c0_4, %c0_5] : memref<256x64xbf16, #tpu.memory_space<vmem>>, vector<256x64xbf16>
    %cst = arith.constant dense<0.000000e+00> : vector<512x64xf32>
    %6 = tpu.matmul %4, %5, %cst {dimension_numbers = #tpu.dot_dimension_numbers<[1], [0], [0], [1], [0, 0, 1, 1], [], []>} : vector<512x256xbf16>, vector<256x64xbf16>, vector<512x64xf32> -> vector<512x64xf32>
    %7 = arith.addf %3, %6 : vector<512x64xf32>
    %c0_6 = arith.constant 0 : index
    %c0_7 = arith.constant 0 : index
    %8 = vector.load %arg7[%c0_6, %c0_7] : memref<512x64xf32, #tpu.memory_space<vmem>>, vector<512x64xf32>
    tpu.vector_store %arg7[%c0_6, %c0_7], %7 {strides = array<i32>} : memref<512x64xf32, #tpu.memory_space<vmem>>, vector<512x64xf32>,
    %c0_i32_8 = arith.constant 0 : i32
    %9 = arith.cmpi eq, %arg2, %c0_i32_8 : i32
    %10 = arith.extui %9 : i1 to i32
    %c0_i32_9 = arith.constant 0 : i32
    %11 = arith.cmpi ne, %10, %c0_i32_9 : i32
    scf.if %11 {
      %c0_10 = arith.constant 0 : index
      %c0_11 = arith.constant 0 : index
      %12 = vector.load %arg7[%c0_10, %c0_11] : memref<512x64xf32, #tpu.memory_space<vmem>>, vector<512x64xf32>
      %c0_12 = arith.constant 0 : index
      %c0_13 = arith.constant 0 : index
      %13 = vector.load %arg5[%c0_12, %c0_13] : memref<1x64xf32, #tpu.memory_space<vmem>>, vector<1x64xf32>
      %14 = vector.broadcast %13 : vector<1x64xf32> to vector<512x64xf32>
      %15 = arith.addf %12, %14 : vector<512x64xf32>
      %cst_14 = arith.constant 0.000000e+00 : f32
      %16 = vector.broadcast %cst_14 : f32 to vector<512x64xf32>
      %17 = arith.maximumf %15, %16 : vector<512x64xf32>
      %18 = arith.truncf %17 : vector<512x64xf32> to vector<512x64xbf16>
      %c0_15 = arith.constant 0 : index
      %c0_16 = arith.constant 0 : index
      %19 = vector.load %arg6[%c0_15, %c0_16] : memref<512x64xbf16, #tpu.memory_space<vmem>>, vector<512x64xbf16>
      tpu.vector_store %arg6[%c0_15, %c0_16], %18 {strides = array<i32>} : memref<512x64xbf16, #tpu.memory_space<vmem>>, vector<512x64xbf16>,
    } else {
    }
    return
  }
  func.func @transform_0(%arg0: i32, %arg1: i32, %arg2: i32) -> (i32, i32) {
    %c0_i32 = arith.constant 0 : i32
    return %arg0, %arg2 : i32, i32
  }
  func.func @transform_1(%arg0: i32, %arg1: i32, %arg2: i32) -> (i32, i32) {
    %c0_i32 = arith.constant 0 : i32
    return %arg2, %arg1 : i32, i32
  }
  func.func @transform_2(%arg0: i32, %arg1: i32, %arg2: i32) -> (i32, i32) {
    %c0_i32 = arith.constant 0 : i32
    %c0_i32_0 = arith.constant 0 : i32
    return %c0_i32, %arg1 : i32, i32
  }
  func.func @transform_3(%arg0: i32, %arg1: i32, %arg2: i32) -> (i32, i32) {
    %c0_i32 = arith.constant 0 : i32
    return %arg0, %arg1 : i32, i32
  }
}

module attributes {stable_mosaic.version = 11 : i64} {
  func.func @_maxpool_kernel(%arg0: i32, %arg1: memref<9x64x128xbf16, #tpu.memory_space<vmem>>, %arg2: memref<64x128xbf16, #tpu.memory_space<vmem>>) attributes {dimension_semantics = [#tpu.dimension_semantics<parallel>], iteration_bounds = array<i64: 1>, scalar_prefetch = 0 : i64, scratch_operands = 0 : i64, tpu.core_type = #tpu.core_type<tc>, window_params = [{transform_indices = @transform_0, window_bounds = array<i64: 9, 64, 128>}, {transform_indices = @transform_1, window_bounds = array<i64: 64, 128>}]} {
    %c0 = arith.constant 0 : index
    %c0_0 = arith.constant 0 : index
    %c0_1 = arith.constant 0 : index
    %0 = vector.load %arg1[%c0, %c0_0, %c0_1] : memref<9x64x128xbf16, #tpu.memory_space<vmem>>, vector<9x64x128xbf16>
    %cst = arith.constant dense<0xFF80> : vector<64x128xbf16>
    %1 = vector.multi_reduction <maximumf>, %0, %cst [0] : vector<9x64x128xbf16> to vector<64x128xbf16>
    %c0_2 = arith.constant 0 : index
    %c0_3 = arith.constant 0 : index
    %2 = vector.load %arg2[%c0_2, %c0_3] : memref<64x128xbf16, #tpu.memory_space<vmem>>, vector<64x128xbf16>
    tpu.vector_store %arg2[%c0_2, %c0_3], %1 {strides = array<i32>} : memref<64x128xbf16, #tpu.memory_space<vmem>>, vector<64x128xbf16>,
    return
  }
  func.func @transform_0(%arg0: i32) -> (i32, i32, i32) {
    %c0_i32 = arith.constant 0 : i32
    %c0_i32_0 = arith.constant 0 : i32
    %c0_i32_1 = arith.constant 0 : i32
    return %c0_i32, %arg0, %c0_i32_0 : i32, i32, i32
  }
  func.func @transform_1(%arg0: i32) -> (i32, i32) {
    %c0_i32 = arith.constant 0 : i32
    %c0_i32_0 = arith.constant 0 : i32
    return %arg0, %c0_i32 : i32, i32
  }
}

</mosaic_0001>

<bundles_post_ra>
// kernel: stem_forward.3
= control target key start
LH: loop header
LB: loop body
LE: loop exit
PB: predicated region body
PF: predicated region fallthrough
CT: control target
= control target key end

     0   :  { %s568_s0 = inlined_call_operand.vmem [shape: bf16[9,64,128], index: 0, kind: input, shape index: {}]   ;;  %s569_s1 = inlined_call_operand.vmem [shape: bf16[64,128], index: 1, kind: output, shape index: {}]  }
   0x1   :  { %v237_v0 = vld [vmem:[%s568_s0] sm:$0xff]   ;;  %v400_v16 = vld [vmem:[%s568_s0 + $0x8] sm:$0xff]   ;;  %v401_v55 = vld [vmem:[%s568_s0 + $0x10] sm:$0xff]  }
   0x2   :  { %v403_v1 = vld [vmem:[%s568_s0 + $0x20] sm:$0xff]   ;;  %v238_v3 = vunpack.c.l.bf16 %v237_v0  ;;  %v239_v4 = vunpack.c.h.bf16 %v237_v0  ;;  %v404_v17 = vld [vmem:[%s568_s0 + $0x28] sm:$0xff]   ;;  %v242_v27 = vunpack.c.l.bf16 %v400_v16  ;;  %v243_v28 = vunpack.c.h.bf16 %v400_v16  ;;  %v405_v60 = vld [vmem:[%s568_s0 + $0x30] sm:$0xff]  }
   0x3   :  { %v407_v2 = vld [vmem:[%s568_s0 + $0x40] sm:$0xff]   ;;  %v254_v5 = vunpack.c.l.bf16 %v403_v1  ;;  %v255_v6 = vunpack.c.h.bf16 %v403_v1  ;;  %v408_v25 = vld [vmem:[%s568_s0 + $0x48] sm:$0xff]   ;;  %v258_v29 = vunpack.c.l.bf16 %v404_v17  ;;  %v259_v30 = vunpack.c.h.bf16 %v404_v17 }
   0x4   :  { %v411_v7 = vld [vmem:[%s568_s0 + $0x60] sm:$0xff]   ;;  %v270_v8 = vunpack.c.l.bf16 %v407_v2  ;;  %v271_v9 = vunpack.c.h.bf16 %v407_v2  ;;  %v412_v35 = vld [vmem:[%s568_s0 + $0x68] sm:$0xff]   ;;  %v274_v38 = vunpack.c.l.bf16 %v408_v25  ;;  %v275_v39 = vunpack.c.h.bf16 %v408_v25  ;;  %v417_v25 = vld [vmem:[%s568_s0 + $0x90] sm:$0xff]  }
   0x5   :  { %v415_v10 = vld [vmem:[%s568_s0 + $0x80] sm:$0xff]   ;;  %v286_v12 = vunpack.c.l.bf16 %v411_v7  ;;  %v287_v13 = vunpack.c.h.bf16 %v411_v7  ;;  %v152_v14 = vmax.f32 %v238_v3, %v254_v5  ;;  %v160_v15 = vmax.f32 %v239_v4, %v255_v6  ;;  %v416_v40 = vld [vmem:[%s568_s0 + $0x88] sm:$0xff]   ;;  %v409_v6 = vld [vmem:[%s568_s0 + $0x50] sm:$0xff]  }
   0x6   :  { %v419_v11 = vld [vmem:[%s568_s0 + $0xa0] sm:$0xff]   ;;  %v302_v18 = vunpack.c.l.bf16 %v415_v10  ;;  %v303_v20 = vunpack.c.h.bf16 %v415_v10  ;;  %v420_v45 = vld [vmem:[%s568_s0 + $0xa8] sm:$0xff]   ;;  %v290_v46 = vunpack.c.l.bf16 %v412_v35  ;;  %v291_v47 = vunpack.c.h.bf16 %v412_v35  ;;  %v402_v35 = vld [vmem:[%s568_s0 + $0x18] sm:$0xff]  }
   0x7   :  { %v423_v19 = vld [vmem:[%s568_s0 + $0xc0] sm:$0xff]   ;;  %v318_v21 = vunpack.c.l.bf16 %v419_v11  ;;  %v153_v23 = vmax.f32 %v152_v14, %v270_v8  ;;  %v161_v24 = vmax.f32 %v160_v15, %v271_v9  ;;  %v319_v31 = vunpack.c.h.bf16 %v419_v11  ;;  %v424_v48 = vld [vmem:[%s568_s0 + $0xc8] sm:$0xff]   ;;  %v413_v11 = vld [vmem:[%s568_s0 + $0x70] sm:$0xff]  }
   0x8   :  { %v427_v22 = vld [vmem:[%s568_s0 + $0xe0] sm:$0xff]   ;;  %v334_v32 = vunpack.c.l.bf16 %v423_v19  ;;  %v335_v36 = vunpack.c.h.bf16 %v423_v19  ;;  %v168_v49 = vmax.f32 %v242_v27, %v258_v29  ;;  %v176_v50 = vmax.f32 %v243_v28, %v259_v30  ;;  %v428_v1 = vld [vmem:[%s568_s0 + $0xe8] sm:$0xff]   ;;  %v421_v28 = vld [vmem:[%s568_s0 + $0xb0] sm:$0xff]  }
   0x9   :  { %v431_v26 = vld [vmem:[%s568_s0 + $0x100] sm:$0xff]   ;;  %v154_v33 = vmax.f32 %v153_v23, %v286_v12  ;;  %v162_v34 = vmax.f32 %v161_v24, %v287_v13  ;;  %v350_v37 = vunpack.c.l.bf16 %v427_v22  ;;  %v351_v41 = vunpack.c.h.bf16 %v427_v22 }
   0xa   :  { %v366_v42 = vunpack.c.l.bf16 %v431_v26  ;;  %v367_v51 = vunpack.c.h.bf16 %v431_v26  ;;  %v306_v54 = vunpack.c.l.bf16 %v416_v40  ;;  %v307_v56 = vunpack.c.h.bf16 %v416_v40  ;;  %v406_v40 = vld [vmem:[%s568_s0 + $0x38] sm:$0xff]  }
   0xb   :  { %v155_v43 = vmax.f32 %v154_v33, %v302_v18  ;;  %v163_v44 = vmax.f32 %v162_v34, %v303_v20  ;;  %v322_v57 = vunpack.c.l.bf16 %v420_v45  ;;  %v169_v58 = vmax.f32 %v168_v49, %v274_v38  ;;  %v432_v18 = vld [vmem:[%s568_s0 + $0x108] sm:$0xff]  }
   0xc   :  { %v177_v59 = vmax.f32 %v176_v50, %v275_v39  ;;  %v323_v63 = vunpack.c.h.bf16 %v420_v45  ;;  %v338_v0 = vunpack.c.l.bf16 %v424_v48  ;;  %v246_v4 = vunpack.c.l.bf16 %v401_v55  ;;  %v425_v45 = vld [vmem:[%s568_s0 + $0xd0] sm:$0xff]   ;;  %v410_v50 = vld [vmem:[%s568_s0 + $0x58] sm:$0xff]  }
   0xd   :  { %v156_v52 = vmax.f32 %v155_v43, %v318_v21  ;;  %v164_v53 = vmax.f32 %v163_v44, %v319_v31  ;;  %v170_v2 = vmax.f32 %v169_v58, %v290_v46  ;;  %v247_v5 = vunpack.c.h.bf16 %v401_v55 }
   0xe   :  { %v178_v3 = vmax.f32 %v177_v59, %v291_v47  ;;  %v262_v9 = vunpack.c.l.bf16 %v405_v60  ;;  %v263_v10 = vunpack.c.h.bf16 %v405_v60  ;;  %v339_v12 = vunpack.c.h.bf16 %v424_v48  ;;  %v414_v60 = vld [vmem:[%s568_s0 + $0x78] sm:$0xff]  }
   0xf   :  { %v157_v61 = vmax.f32 %v156_v52, %v334_v32  ;;  %v165_v62 = vmax.f32 %v164_v53, %v335_v36  ;;  %v354_v13 = vunpack.c.l.bf16 %v428_v1  ;;  %v171_v14 = vmax.f32 %v170_v2, %v306_v54  ;;  %v429_v53 = vld [vmem:[%s568_s0 + $0xf0] sm:$0xff]  }
  0x10   :  { %v179_v15 = vmax.f32 %v178_v3, %v307_v56  ;;  %v278_v19 = vunpack.c.l.bf16 %v409_v6  ;;  %v279_v20 = vunpack.c.h.bf16 %v409_v6  ;;  %v355_v21 = vunpack.c.h.bf16 %v428_v1 }
  0x11   :  { %v158_v7 = vmax.f32 %v157_v61, %v350_v37  ;;  %v166_v8 = vmax.f32 %v165_v62, %v351_v41  ;;  %v172_v22 = vmax.f32 %v171_v14, %v322_v57  ;;  %v294_v24 = vunpack.c.l.bf16 %v413_v11  ;;  %v433_v62 = vld [vmem:[%s568_s0 + $0x110] sm:$0xff]   ;;  %v422_v14 = vld [vmem:[%s568_s0 + $0xb8] sm:$0xff]  }
  0x12   :  { %v180_v23 = vmax.f32 %v179_v15, %v323_v63  ;;  %v295_v27 = vunpack.c.h.bf16 %v413_v11  ;;  %v184_v29 = vmax.f32 %v246_v4, %v262_v9  ;;  %v192_v30 = vmax.f32 %v247_v5, %v263_v10  ;;  %v418_v5 = vld [vmem:[%s568_s0 + $0x98] sm:$0xff]  }
  0x13   :  { %v159_v16 = vmax.f32 %v158_v7, %v366_v42  ;;  %v167_v17 = vmax.f32 %v166_v8, %v367_v51  ;;  %v370_v31 = vunpack.c.l.bf16 %v432_v18  ;;  %v371_v32 = vunpack.c.h.bf16 %v432_v18 }
  0x14   :  { %v173_v33 = vmax.f32 %v172_v22, %v338_v0  ;;  %v181_v34 = vmax.f32 %v180_v23, %v339_v12  ;;  %v310_v36 = vunpack.c.l.bf16 %v417_v25  ;;  %v311_v37 = vunpack.c.h.bf16 %v417_v25 }
  0x15   :  { %v383_v26 = vpack.c.bf16 %v167_v17, %v159_v16  ;;  %v185_v38 = vmax.f32 %v184_v29, %v278_v19  ;;  %v193_v39 = vmax.f32 %v192_v30, %v279_v20  ;;  %v326_v43 = vunpack.c.l.bf16 %v421_v28 }
  0x16   :  { %v174_v41 = vmax.f32 %v173_v33, %v354_v13  ;;  %v182_v42 = vmax.f32 %v181_v34, %v355_v21  ;;  %v327_v44 = vunpack.c.h.bf16 %v421_v28  ;;  %v250_v48 = vunpack.c.l.bf16 %v402_v35  ;;  %v426_v21 = vld [vmem:[%s568_s0 + $0xd8] sm:$0xff]  }
  0x17   :  { %384 = vst [vmem:[%s569_s1] sm:$0xff] %v383_v26   ;;  %v186_v46 = vmax.f32 %v185_v38, %v294_v24  ;;  %v194_v47 = vmax.f32 %v193_v39, %v295_v27  ;;  %v251_v49 = vunpack.c.h.bf16 %v402_v35  ;;  %v266_v54 = vunpack.c.l.bf16 %v406_v40  ;;  %v430_v28 = vld [vmem:[%s568_s0 + $0xf8] sm:$0xff]  }
  0x18   :  { %v175_v51 = vmax.f32 %v174_v41, %v370_v31  ;;  %v183_v52 = vmax.f32 %v182_v42, %v371_v32  ;;  %v267_v55 = vunpack.c.h.bf16 %v406_v40  ;;  %v342_v56 = vunpack.c.l.bf16 %v425_v45  ;;  %v434_v34 = vld [vmem:[%s568_s0 + $0x118] sm:$0xff]  }
  0x19   :  { %v343_v57 = vunpack.c.h.bf16 %v425_v45  ;;  %v187_v58 = vmax.f32 %v186_v46, %v310_v36  ;;  %v195_v59 = vmax.f32 %v194_v47, %v311_v37  ;;  %v282_v63 = vunpack.c.l.bf16 %v410_v50 }
  0x1a   :  { %v388_v61 = vpack.c.bf16 %v183_v52, %v175_v51  ;;  %v283_v0 = vunpack.c.h.bf16 %v410_v50  ;;  %v358_v1 = vunpack.c.l.bf16 %v429_v53  ;;  %v359_v2 = vunpack.c.h.bf16 %v429_v53 }
  0x1b   :  { %v188_v3 = vmax.f32 %v187_v58, %v326_v43  ;;  %v196_v4 = vmax.f32 %v195_v59, %v327_v44  ;;  %v298_v6 = vunpack.c.l.bf16 %v414_v60  ;;  %v299_v7 = vunpack.c.h.bf16 %v414_v60 }
  0x1c   :  { %435 = vst [vmem:[%s569_s1 + $0x8] sm:$0xff] %v388_v61   ;;  %v200_v8 = vmax.f32 %v250_v48, %v266_v54  ;;  %v208_v9 = vmax.f32 %v251_v49, %v267_v55  ;;  %v374_v10 = vunpack.c.l.bf16 %v433_v62  ;;  %v375_v11 = vunpack.c.h.bf16 %v433_v62 }
  0x1d   :  { %v189_v12 = vmax.f32 %v188_v3, %v342_v56  ;;  %v197_v13 = vmax.f32 %v196_v4, %v343_v57  ;;  %v314_v15 = vunpack.c.l.bf16 %v418_v5  ;;  %v315_v16 = vunpack.c.h.bf16 %v418_v5 }
  0x1e   :  { %v201_v17 = vmax.f32 %v200_v8, %v282_v63  ;;  %v209_v18 = vmax.f32 %v208_v9, %v283_v0  ;;  %v330_v22 = vunpack.c.l.bf16 %v422_v14  ;;  %v331_v23 = vunpack.c.h.bf16 %v422_v14 }
  0x1f   :  { %v190_v19 = vmax.f32 %v189_v12, %v358_v1  ;;  %v198_v20 = vmax.f32 %v197_v13, %v359_v2  ;;  %v346_v29 = vunpack.c.l.bf16 %v426_v21  ;;  %v347_v30 = vunpack.c.h.bf16 %v426_v21 }
  0x20   :  { %v202_v24 = vmax.f32 %v201_v17, %v298_v6  ;;  %v210_v25 = vmax.f32 %v209_v18, %v299_v7  ;;  %v362_v35 = vunpack.c.l.bf16 %v430_v28  ;;  %v363_v36 = vunpack.c.h.bf16 %v430_v28 }
  0x21   :  { %v191_v26 = vmax.f32 %v190_v19, %v374_v10  ;;  %v199_v27 = vmax.f32 %v198_v20, %v375_v11  ;;  %v378_v39 = vunpack.c.l.bf16 %v434_v34  ;;  %v379_v40 = vunpack.c.h.bf16 %v434_v34 }
  0x22   :  { %v203_v31 = vmax.f32 %v202_v24, %v314_v15  ;;  %v211_v32 = vmax.f32 %v210_v25, %v315_v16 }
  0x23   :  { %v393_v33 = vpack.c.bf16 %v199_v27, %v191_v26 }
  0x24   :  { %v204_v37 = vmax.f32 %v203_v31, %v330_v22  ;;  %v212_v38 = vmax.f32 %v211_v32, %v331_v23 }
  0x25   :  { %436 = vst [vmem:[%s569_s1 + $0x10] sm:$0xff] %v393_v33  }
  0x26   :  { %v205_v41 = vmax.f32 %v204_v37, %v346_v29  ;;  %v213_v42 = vmax.f32 %v212_v38, %v347_v30 }
  0x28   :  { %v206_v43 = vmax.f32 %v205_v41, %v362_v35  ;;  %v214_v44 = vmax.f32 %v213_v42, %v363_v36 }
  0x2a   :  { %v207_v45 = vmax.f32 %v206_v43, %v378_v39  ;;  %v215_v46 = vmax.f32 %v214_v44, %v379_v40 }
  0x2c   :  { %v398_v47 = vpack.c.bf16 %v215_v46, %v207_v45 }
  0x2e   :  { %437 = vst [vmem:[%s569_s1 + $0x18] sm:$0xff] %v398_v47  }

// kernel: stem_forward.2
= control target key start
LH: loop header
LB: loop body
LE: loop exit
PB: predicated region body
PF: predicated region fallthrough
CT: control target
= control target key end

     0   :  { %vm18_vm0 = vcmask 523264   ;;  %vm1389_vm1 = vcmask 519168   ;;  %s2852_s1 = inlined_call_operand.vmem [shape: bf16[256,64], index: 1, kind: input, shape index: {}]   ;;  %s2853_s0 = inlined_call_operand.vmem [shape: bf16[512,256], index: 0, kind: input, shape index: {}]   ;;  %s2854_s2 = inlined_call_operand.vmem [shape: f32[1,64], index: 2, kind: input, shape index: {}]   ;;  %s2855_s3 = inlined_call_operand.vmem [shape: bf16[512,64], index: 3, kind: output, shape index: {}]  }
   0x1   :  { %v1849_v0 = vld [vmem:[%s2852_s1 + $0x38] sm:$0xff]  ;;  %v1848_v2 = vld [vmem:[%s2852_s1 + $0x30] sm:$0xff]  ;;  %v1847_v4 = vld [vmem:[%s2852_s1 + $0x28] sm:$0xff] }
   0x2   :  { %v1857_v1 = vld [vmem:[%s2852_s1 + $0x78] sm:$0xff]  ;;  %659 = vmatpush.bf16.msra.mxu0 %v1849_v0  ;;  %1858 = vmatpush.bf16.msra.mxu2 %v1849_v0  ;;  %v1856_v3 = vld [vmem:[%s2852_s1 + $0x70] sm:$0xff]  ;;  %v1855_v5 = vld [vmem:[%s2852_s1 + $0x68] sm:$0xff] }
   0x3   :  { %828 = vmatpush.bf16.msra.mxu1 %v1857_v1  ;;  %1866 = vmatpush.bf16.msra.mxu3 %v1857_v1  ;;  %v1846_v6 = vld [vmem:[%s2852_s1 + $0x20] sm:$0xff]  ;;  %v1845_v8 = vld [vmem:[%s2852_s1 + $0x18] sm:$0xff]  ;;  %v1844_v10 = vld [vmem:[%s2852_s1 + $0x10] sm:$0xff] }
   0x4   :  { %v1854_v7 = vld [vmem:[%s2852_s1 + $0x60] sm:$0xff]  ;;  %v1853_v9 = vld [vmem:[%s2852_s1 + $0x58] sm:$0xff]  ;;  %v1852_v11 = vld [vmem:[%s2852_s1 + $0x50] sm:$0xff] }
   0x5   :  { %v1843_v12 = vld [vmem:[%s2852_s1 + $0x8] sm:$0xff]  ;;  %v1842_v14 = vld [vmem:[%s2852_s1] sm:$0xff]  ;;  %v1468_v28 = vld [vmem:[%s2853_s0 + $0x10] sm:$0xf] }
   0x6   :  { %660 = vmatpush.bf16.msra.mxu0 %v1848_v2  ;;  %1859 = vmatpush.bf16.msra.mxu2 %v1848_v2  ;;  %v1851_v13 = vld [vmem:[%s2852_s1 + $0x48] sm:$0xff]  ;;  %v1850_v15 = vld [vmem:[%s2852_s1 + $0x40] sm:$0xff]  ;;  %v1781_v29 = vld [vmem:[%s2853_s0 + $0x14] sm:$0xf0] }
   0x7   :  { %829 = vmatpush.bf16.msra.mxu1 %v1856_v3  ;;  %1867 = vmatpush.bf16.msra.mxu3 %v1856_v3  ;;  %v1460_v16 = vld [vmem:[%s2853_s0] sm:$0xf]  ;;  %v1779_v17 = vld [vmem:[%s2853_s0 + $0x4] sm:$0xf0]  ;;  %v1778_v20 = vld [vmem:[%s2853_s0 + $0x4] sm:$0xf]  ;;  %v1469_v36 = vor.u32 %v1781_v29, %v1468_v28 }
   0x8   :  { %v1588_v18 = vld [vmem:[%s2853_s0 + $0x100] sm:$0xf]  ;;  %v1811_v19 = vld [vmem:[%s2853_s0 + $0x104] sm:$0xf0]  ;;  %v1462_v21 = vld [vmem:[%s2853_s0 + $0x8] sm:$0xf0]  ;;  %v1461_v24 = vor.u32 %v1779_v17, %v1460_v16 }
   0x9   :  { %v1810_v22 = vld [vmem:[%s2853_s0 + $0x104] sm:$0xf]  ;;  %v1590_v23 = vld [vmem:[%s2853_s0 + $0x108] sm:$0xf0]  ;;  %v1589_v25 = vor.u32 %v1811_v19, %v1588_v18  ;;  %v1465_v26 = vor.u32 %v1778_v20, %v1462_v21  ;;  %v1596_v30 = vld [vmem:[%s2853_s0 + $0x110] sm:$0xf] }
   0xa   :  { %661 = vmatpush.bf16.msra.mxu0 %v1847_v4  ;;  %1860 = vmatpush.bf16.msra.mxu2 %v1847_v4  ;;  %v1593_v27 = vor.u32 %v1810_v22, %v1590_v23  ;;  %v1813_v31 = vld [vmem:[%s2853_s0 + $0x114] sm:$0xf0]  ;;  %v1780_v32 = vld [vmem:[%s2853_s0 + $0x14] sm:$0xf]  ;;  %v1470_v33 = vld [vmem:[%s2853_s0 + $0x18] sm:$0xf0] }
   0xb   :  { %830 = vmatpush.bf16.msra.mxu1 %v1855_v5  ;;  %1868 = vmatpush.bf16.msra.mxu3 %v1855_v5  ;;  %v1812_v34 = vld [vmem:[%s2853_s0 + $0x114] sm:$0xf]  ;;  %v1598_v35 = vld [vmem:[%s2853_s0 + $0x118] sm:$0xf0]  ;;  %v1597_v37 = vor.u32 %v1813_v31, %v1596_v30  ;;  %v1473_v38 = vor.u32 %v1780_v32, %v1470_v33  ;;  %v1476_v40 = vld [vmem:[%s2853_s0 + $0x20] sm:$0xf] }
   0xc   :  { %v1601_v39 = vor.u32 %v1812_v34, %v1598_v35  ;;  %v1783_v41 = vld [vmem:[%s2853_s0 + $0x24] sm:$0xf0]  ;;  %v1604_v42 = vld [vmem:[%s2853_s0 + $0x120] sm:$0xf]  ;;  %v1782_v44 = vld [vmem:[%s2853_s0 + $0x24] sm:$0xf] }
   0xd   :  { %v1815_v43 = vld [vmem:[%s2853_s0 + $0x124] sm:$0xf0]  ;;  %v1478_v45 = vld [vmem:[%s2853_s0 + $0x28] sm:$0xf0]  ;;  %v1814_v46 = vld [vmem:[%s2853_s0 + $0x124] sm:$0xf]  ;;  %v1477_v48 = vor.u32 %v1783_v41, %v1476_v40 }
   0xe   :  { %662 = vmatpush.bf16.msra.mxu0 %v1846_v6  ;;  %1861 = vmatpush.bf16.msra.mxu2 %v1846_v6  ;;  %v1606_v47 = vld [vmem:[%s2853_s0 + $0x128] sm:$0xf0]  ;;  %v1605_v49 = vor.u32 %v1815_v43, %v1604_v42  ;;  %v1481_v50 = vor.u32 %v1782_v44, %v1478_v45  ;;  %v1484_v52 = vld [vmem:[%s2853_s0 + $0x30] sm:$0xf]  ;;  %v1785_v53 = vld [vmem:[%s2853_s0 + $0x34] sm:$0xf0] }
   0xf   :  { %831 = vmatpush.bf16.msra.mxu1 %v1854_v7  ;;  %1869 = vmatpush.bf16.msra.mxu3 %v1854_v7  ;;  %v1609_v51 = vor.u32 %v1814_v46, %v1606_v47  ;;  %v1612_v54 = vld [vmem:[%s2853_s0 + $0x130] sm:$0xf]  ;;  %v1817_v55 = vld [vmem:[%s2853_s0 + $0x134] sm:$0xf0]  ;;  %v1784_v56 = vld [vmem:[%s2853_s0 + $0x34] sm:$0xf]  ;;  %v1485_v60 = vor.u32 %v1785_v53, %v1484_v52 }
  0x10   :  { %v1486_v57 = vld [vmem:[%s2853_s0 + $0x38] sm:$0xf0]  ;;  %v1816_v58 = vld [vmem:[%s2853_s0 + $0x134] sm:$0xf]  ;;  %v1613_v61 = vor.u32 %v1817_v55, %v1612_v54  ;;  %v1492_v0 = vld [vmem:[%s2853_s0 + $0x40] sm:$0xf] }
  0x11   :  { %v1614_v59 = vld [vmem:[%s2853_s0 + $0x138] sm:$0xf0]  ;;  %v1489_v62 = vor.u32 %v1784_v56, %v1486_v57  ;;  %v1787_v1 = vld [vmem:[%s2853_s0 + $0x44] sm:$0xf0]  ;;  %v1620_v2 = vld [vmem:[%s2853_s0 + $0x140] sm:$0xf] }
  0x12   :  { %663 = vmatpush.bf16.msra.mxu0 %v1845_v8  ;;  %1862 = vmatpush.bf16.msra.mxu2 %v1845_v8  ;;  %v1617_v63 = vor.u32 %v1816_v58, %v1614_v59  ;;  %v1819_v3 = vld [vmem:[%s2853_s0 + $0x144] sm:$0xf0]  ;;  %v1786_v4 = vld [vmem:[%s2853_s0 + $0x44] sm:$0xf]  ;;  %v1494_v5 = vld [vmem:[%s2853_s0 + $0x48] sm:$0xf0]  ;;  %v1493_v8 = vor.u32 %v1787_v1, %v1492_v0 }
  0x13   :  { %832 = vmatpush.bf16.msra.mxu1 %v1853_v9  ;;  %1870 = vmatpush.bf16.msra.mxu3 %v1853_v9  ;;  %v1818_v6 = vld [vmem:[%s2853_s0 + $0x144] sm:$0xf]  ;;  %v1622_v7 = vld [vmem:[%s2853_s0 + $0x148] sm:$0xf0]  ;;  %v1621_v9 = vor.u32 %v1819_v3, %v1620_v2  ;;  %v1788_v16 = vld [vmem:[%s2853_s0 + $0x54] sm:$0xf] }
  0x14   :  { %v1502_v17 = vld [vmem:[%s2853_s0 + $0x58] sm:$0xf0]  ;;  %v1820_v18 = vld [vmem:[%s2853_s0 + $0x154] sm:$0xf]  ;;  %v1790_v28 = vld [vmem:[%s2853_s0 + $0x64] sm:$0xf] }
  0x15   :  { %v1630_v19 = vld [vmem:[%s2853_s0 + $0x158] sm:$0xf0]  ;;  %v1505_v22 = vor.u32 %v1788_v16, %v1502_v17  ;;  %v1510_v29 = vld [vmem:[%s2853_s0 + $0x68] sm:$0xf0]  ;;  %v1822_v30 = vld [vmem:[%s2853_s0 + $0x164] sm:$0xf] }
  0x16   :  { %664 = vmatpush.bf16.msra.mxu0 %v1844_v10  ;;  %1863 = vmatpush.bf16.msra.mxu2 %v1844_v10  ;;  %v1497_v10 = vor.u32 %v1786_v4, %v1494_v5  ;;  %v1633_v23 = vor.u32 %v1820_v18, %v1630_v19  ;;  %v1638_v31 = vld [vmem:[%s2853_s0 + $0x168] sm:$0xf0]  ;;  %v1513_v34 = vor.u32 %v1790_v28, %v1510_v29  ;;  %v1825_v40 = vld [vmem:[%s2853_s0 + $0x174] sm:$0xf0]  ;;  %v1792_v41 = vld [vmem:[%s2853_s0 + $0x74] sm:$0xf] }
  0x17   :  { %833 = vmatpush.bf16.msra.mxu1 %v1852_v11  ;;  %1871 = vmatpush.bf16.msra.mxu3 %v1852_v11  ;;  %v1625_v11 = vor.u32 %v1818_v6, %v1622_v7  ;;  %v1641_v35 = vor.u32 %v1822_v30, %v1638_v31  ;;  %v1518_v42 = vld [vmem:[%s2853_s0 + $0x78] sm:$0xf0]  ;;  %v1824_v43 = vld [vmem:[%s2853_s0 + $0x174] sm:$0xf]  ;;  %v1827_v52 = vld [vmem:[%s2853_s0 + $0x184] sm:$0xf0] }
  0x18   :  { %v1646_v44 = vld [vmem:[%s2853_s0 + $0x178] sm:$0xf0]  ;;  %v1521_v47 = vor.u32 %v1792_v41, %v1518_v42  ;;  %v1794_v53 = vld [vmem:[%s2853_s0 + $0x84] sm:$0xf]  ;;  %v1526_v54 = vld [vmem:[%s2853_s0 + $0x88] sm:$0xf0] }
  0x19   :  { %v1826_v55 = vld [vmem:[%s2853_s0 + $0x184] sm:$0xf]  ;;  %v1654_v56 = vld [vmem:[%s2853_s0 + $0x188] sm:$0xf0]  ;;  %v2244_v5 = vld [vmem:[%s2854_s2] ss:$0 sm:$0xff] }
  0x1a   :  { %665 = vmatpush.bf16.msra.mxu0 %v1843_v12  ;;  %1864 = vmatpush.bf16.msra.mxu2 %v1843_v12  ;;  %v1500_v12 = vld [vmem:[%s2853_s0 + $0x50] sm:$0xf]  ;;  %v1540_v31 = vld [vmem:[%s2853_s0 + $0xa0] sm:$0xf] }
  0x1b   :  { %834 = vmatpush.bf16.msra.mxu1 %v1851_v13  ;;  %1872 = vmatpush.bf16.msra.mxu3 %v1851_v13  ;;  %v1789_v13 = vld [vmem:[%s2853_s0 + $0x54] sm:$0xf0]  ;;  %v1532_v7 = vld [vmem:[%s2853_s0 + $0x90] sm:$0xf] }
  0x1c   :  { %v1501_v20 = vor.u32 %v1789_v13, %v1500_v12  ;;  %v1534_v12 = vld [vmem:[%s2853_s0 + $0x98] sm:$0xf0] }
  0x1e   :  { %666 = vmatpush.bf16.msra.mxu0 %v1842_v14  ;;  %1865 = vmatpush.bf16.msra.mxu2 %v1842_v14  ;;  %v1628_v14 = vld [vmem:[%s2853_s0 + $0x150] sm:$0xf] }
  0x1f   :  { %835 = vmatpush.bf16.msra.mxu1 %v1850_v15  ;;  %1873 = vmatpush.bf16.msra.mxu3 %v1850_v15  ;;  %v1821_v15 = vld [vmem:[%s2853_s0 + $0x154] sm:$0xf0] }
  0x20   :  { %v1629_v21 = vor.u32 %v1821_v15, %v1628_v14  ;;  %v1828_v14 = vld [vmem:[%s2853_s0 + $0x194] sm:$0xf]  ;;  %v1662_v15 = vld [vmem:[%s2853_s0 + $0x198] sm:$0xf0] }
  0x21   :  { %667 = vmatmul.bf16.vlgmr.msra.gmra.mxu0 %v1461_v24  ;;  %747 = vmatmul.bf16.vlgmr.msra.gmra.mxu2 %v1589_v25  ;;  %v1508_v24 = vld [vmem:[%s2853_s0 + $0x60] sm:$0xf]  ;;  %v1791_v25 = vld [vmem:[%s2853_s0 + $0x64] sm:$0xf0] }
  0x22   :  { %836 = vmatmul.bf16.vlgmr.msra.gmra.mxu1 %v1465_v26  ;;  %916 = vmatmul.bf16.vlgmr.msra.gmra.mxu3 %v1593_v27  ;;  %v1636_v26 = vld [vmem:[%s2853_s0 + $0x160] sm:$0xf]  ;;  %v1823_v27 = vld [vmem:[%s2853_s0 + $0x164] sm:$0xf0]  ;;  %v1509_v32 = vor.u32 %v1791_v25, %v1508_v24  ;;  %v1665_v24 = vor.u32 %v1828_v14, %v1662_v15 }
  0x23   :  { %v1637_v33 = vor.u32 %v1823_v27, %v1636_v26 }
  0x31   :  { %672 = vmatmul.bf16.gmra.mxu0 %v1469_v36  ;;  %752 = vmatmul.bf16.gmra.mxu2 %v1597_v37  ;;  %v1877_v36 = vmov 0.0   ;;  %v1516_v37 = vld [vmem:[%s2853_s0 + $0x70] sm:$0xf] }
  0x32   :  { %841 = vmatmul.bf16.gmra.mxu1 %v1473_v38  ;;  %921 = vmatmul.bf16.gmra.mxu3 %v1601_v39  ;;  %19 = vst.msk [vmem:[#allocation2] sm:$0xff] %vm18_vm0, %v1877_v36  ;;  %v1793_v38 = vld [vmem:[%s2853_s0 + $0x74] sm:$0xf0]  ;;  %v1644_v39 = vld [vmem:[%s2853_s0 + $0x170] sm:$0xf] }
  0x33   :  { %20 = vst.msk [vmem:[#allocation2 + $0x8] sm:$0xff] %vm18_vm0, %v1877_v36  ;;  %v1517_v45 = vor.u32 %v1793_v38, %v1516_v37  ;;  %v1645_v46 = vor.u32 %v1825_v40, %v1644_v39  ;;  %v1798_v39 = vld [vmem:[%s2853_s0 + $0xa4] sm:$0xf]  ;;  %v1542_v40 = vld [vmem:[%s2853_s0 + $0xa8] sm:$0xf0] }
  0x34   :  { %21 = vst.msk [vmem:[#allocation2 + $0x10] sm:$0xff] %vm18_vm0, %v1877_v36 }
  0x35   :  { %22 = vst.msk [vmem:[#allocation2 + $0x18] sm:$0xff] %vm18_vm0, %v1877_v36 }
  0x36   :  { %23 = vst.msk [vmem:[#allocation2 + $0x20] sm:$0xff] %vm18_vm0, %v1877_v36 }
  0x37   :  { %24 = vst.msk [vmem:[#allocation2 + $0x28] sm:$0xff] %vm18_vm0, %v1877_v36 }
  0x38   :  { %25 = vst.msk [vmem:[#allocation2 + $0x30] sm:$0xff] %vm18_vm0, %v1877_v36 }
  0x39   :  { %26 = vst.msk [vmem:[#allocation2 + $0x38] sm:$0xff] %vm18_vm0, %v1877_v36 }
  0x3a   :  { %27 = vst.msk [vmem:[#allocation2 + $0x40] sm:$0xff] %vm18_vm0, %v1877_v36  ;;  %v84_v41 = vld [vmem:[#allocation2 + $0x8] sm:$0xff] }
  0x3b   :  { %28 = vst.msk [vmem:[#allocation2 + $0x48] sm:$0xff] %vm18_vm0, %v1877_v36 }
  0x3c   :  { %29 = vst.msk [vmem:[#allocation2 + $0x50] sm:$0xff] %vm18_vm0, %v1877_v36 }
  0x3d   :  { %30 = vst.msk [vmem:[#allocation2 + $0x58] sm:$0xff] %vm18_vm0, %v1877_v36 }
  0x3e   :  { %31 = vst.msk [vmem:[#allocation2 + $0x60] sm:$0xff] %vm18_vm0, %v1877_v36 }
  0x3f   :  { %32 = vst.msk [vmem:[#allocation2 + $0x68] sm:$0xff] %vm18_vm0, %v1877_v36 }
  0x40   :  { %33 = vst.msk [vmem:[#allocation2 + $0x70] sm:$0xff] %vm18_vm0, %v1877_v36 }
  0x41   :  { %677 = vmatmul.bf16.gmra.mxu0 %v1477_v48  ;;  %757 = vmatmul.bf16.gmra.mxu2 %v1605_v49  ;;  %v1649_v48 = vor.u32 %v1824_v43, %v1646_v44  ;;  %34 = vst.msk [vmem:[#allocation2 + $0x78] sm:$0xff] %vm18_vm0, %v1877_v36  ;;  %v1524_v49 = vld [vmem:[%s2853_s0 + $0x80] sm:$0xf]  ;;  %v1830_v43 = vld [vmem:[%s2853_s0 + $0x1a4] sm:$0xf] }
  0x42   :  { %846 = vmatmul.bf16.gmra.mxu1 %v1481_v50  ;;  %926 = vmatmul.bf16.gmra.mxu3 %v1609_v51  ;;  %35 = vst.msk [vmem:[#allocation2 + $0x80] sm:$0xff] %vm18_vm0, %v1877_v36  ;;  %v1795_v50 = vld [vmem:[%s2853_s0 + $0x84] sm:$0xf0]  ;;  %v1652_v51 = vld [vmem:[%s2853_s0 + $0x180] sm:$0xf] }
  0x43   :  { %36 = vst.msk [vmem:[#allocation2 + $0x88] sm:$0xff] %vm18_vm0, %v1877_v36  ;;  %v1525_v57 = vor.u32 %v1795_v50, %v1524_v49  ;;  %v1653_v58 = vor.u32 %v1827_v52, %v1652_v51  ;;  %v1670_v44 = vld [vmem:[%s2853_s0 + $0x1a8] sm:$0xf0]  ;;  %v85_v49 = vld [vmem:[#allocation2 + $0x10] sm:$0xff] }
  0x44   :  { %37 = vst.msk [vmem:[#allocation2 + $0x90] sm:$0xff] %vm18_vm0, %v1877_v36 }
  0x45   :  { %38 = vst.msk [vmem:[#allocation2 + $0x98] sm:$0xff] %vm18_vm0, %v1877_v36 }
  0x46   :  { %39 = vst.msk [vmem:[#allocation2 + $0xa0] sm:$0xff] %vm18_vm0, %v1877_v36 }
  0x47   :  { %40 = vst.msk [vmem:[#allocation2 + $0xa8] sm:$0xff] %vm18_vm0, %v1877_v36 }
  0x48   :  { %41 = vst.msk [vmem:[#allocation2 + $0xb0] sm:$0xff] %vm18_vm0, %v1877_v36 }
  0x49   :  { %42 = vst.msk [vmem:[#allocation2 + $0xb8] sm:$0xff] %vm18_vm0, %v1877_v36 }
  0x4a   :  { %43 = vst.msk [vmem:[#allocation2 + $0xc0] sm:$0xff] %vm18_vm0, %v1877_v36 }
  0x4b   :  { %44 = vst.msk [vmem:[#allocation2 + $0xc8] sm:$0xff] %vm18_vm0, %v1877_v36 }
  0x4c   :  { %45 = vst.msk [vmem:[#allocation2 + $0xd0] sm:$0xff] %vm18_vm0, %v1877_v36 }
  0x4d   :  { %46 = vst.msk [vmem:[#allocation2 + $0xd8] sm:$0xff] %vm18_vm0, %v1877_v36 }
  0x4e   :  { %47 = vst.msk [vmem:[#allocation2 + $0xe0] sm:$0xff] %vm18_vm0, %v1877_v36 }
  0x4f   :  { %48 = vst.msk [vmem:[#allocation2 + $0xe8] sm:$0xff] %vm18_vm0, %v1877_v36 }
  0x50   :  { %49 = vst.msk [vmem:[#allocation2 + $0xf0] sm:$0xff] %vm18_vm0, %v1877_v36 }
  0x51   :  { %682 = vmatmul.bf16.gmra.mxu0 %v1485_v60  ;;  %762 = vmatmul.bf16.gmra.mxu2 %v1613_v61  ;;  %50 = vst.msk [vmem:[#allocation2 + $0xf8] sm:$0xff] %vm18_vm0, %v1877_v36  ;;  %v1529_v60 = vor.u32 %v1794_v53, %v1526_v54  ;;  %v1657_v61 = vor.u32 %v1826_v55, %v1654_v56 }
  0x52   :  { %851 = vmatmul.bf16.gmra.mxu1 %v1489_v62  ;;  %931 = vmatmul.bf16.gmra.mxu3 %v1617_v63  ;;  %v83_v62 = vld [vmem:[#allocation2] sm:$0xff]  ;;  %51 = vst.msk [vmem:[#allocation2 + $0x100] sm:$0xff] %vm18_vm0, %v1877_v36 }
  0x53   :  { %52 = vst.msk [vmem:[#allocation2 + $0x108] sm:$0xff] %vm18_vm0, %v1877_v36 }
  0x54   :  { %53 = vst.msk [vmem:[#allocation2 + $0x110] sm:$0xff] %vm18_vm0, %v1877_v36 }
  0x55   :  { %54 = vst.msk [vmem:[#allocation2 + $0x118] sm:$0xff] %vm18_vm0, %v1877_v36 }
  0x56   :  { %55 = vst.msk [vmem:[#allocation2 + $0x120] sm:$0xff] %vm18_vm0, %v1877_v36 }
  0x57   :  { %56 = vst.msk [vmem:[#allocation2 + $0x128] sm:$0xff] %vm18_vm0, %v1877_v36 }
  0x58   :  { %57 = vst.msk [vmem:[#allocation2 + $0x130] sm:$0xff] %vm18_vm0, %v1877_v36 }
  0x59   :  { %58 = vst.msk [vmem:[#allocation2 + $0x138] sm:$0xff] %vm18_vm0, %v1877_v36  ;;  %v115_v37 = vld [vmem:[#allocation2 + $0x100] sm:$0xff] }
  0x5a   :  { %59 = vst.msk [vmem:[#allocation2 + $0x140] sm:$0xff] %vm18_vm0, %v1877_v36 }
  0x5b   :  { %60 = vst.msk [vmem:[#allocation2 + $0x148] sm:$0xff] %vm18_vm0, %v1877_v36  ;;  %v117_v55 = vld [vmem:[#allocation2 + $0x110] sm:$0xff] }
  0x5c   :  { %61 = vst.msk [vmem:[#allocation2 + $0x150] sm:$0xff] %vm18_vm0, %v1877_v36 }
  0x5d   :  { %62 = vst.msk [vmem:[#allocation2 + $0x158] sm:$0xff] %vm18_vm0, %v1877_v36 }
  0x5e   :  { %63 = vst.msk [vmem:[#allocation2 + $0x160] sm:$0xff] %vm18_vm0, %v1877_v36 }
  0x5f   :  { %64 = vst.msk [vmem:[#allocation2 + $0x168] sm:$0xff] %vm18_vm0, %v1877_v36 }
  0x60   :  { %65 = vst.msk [vmem:[#allocation2 + $0x170] sm:$0xff] %vm18_vm0, %v1877_v36 }
  0x61   :  { %687 = vmatmul.bf16.gmra.mxu0 %v1493_v8  ;;  %767 = vmatmul.bf16.gmra.mxu2 %v1621_v9  ;;  %v1797_v8 = vld [vmem:[%s2853_s0 + $0x94] sm:$0xf0]  ;;  %v1660_v9 = vld [vmem:[%s2853_s0 + $0x190] sm:$0xf]  ;;  %66 = vst.msk [vmem:[#allocation2 + $0x178] sm:$0xff] %vm18_vm0, %v1877_v36 }
  0x62   :  { %856 = vmatmul.bf16.gmra.mxu1 %v1497_v10  ;;  %936 = vmatmul.bf16.gmra.mxu3 %v1625_v11  ;;  %v1829_v10 = vld [vmem:[%s2853_s0 + $0x194] sm:$0xf0]  ;;  %v1796_v11 = vld [vmem:[%s2853_s0 + $0x94] sm:$0xf]  ;;  %v1533_v19 = vor.u32 %v1797_v8, %v1532_v7  ;;  %67 = vst.msk [vmem:[#allocation2 + $0x180] sm:$0xff] %vm18_vm0, %v1877_v36 }
  0x63   :  { %68 = vst.msk [vmem:[#allocation2 + $0x188] sm:$0xff] %vm18_vm0, %v1877_v36 }
  0x64   :  { %69 = vst.msk [vmem:[#allocation2 + $0x190] sm:$0xff] %vm18_vm0, %v1877_v36 }
  0x65   :  { %70 = vst.msk [vmem:[#allocation2 + $0x198] sm:$0xff] %vm18_vm0, %v1877_v36 }
  0x66   :  { %71 = vst.msk [vmem:[#allocation2 + $0x1a0] sm:$0xff] %vm18_vm0, %v1877_v36 }
  0x67   :  { %72 = vst.msk [vmem:[#allocation2 + $0x1a8] sm:$0xff] %vm18_vm0, %v1877_v36 }
  0x68   :  { %73 = vst.msk [vmem:[#allocation2 + $0x1b0] sm:$0xff] %vm18_vm0, %v1877_v36 }
  0x69   :  { %74 = vst.msk [vmem:[#allocation2 + $0x1b8] sm:$0xff] %vm18_vm0, %v1877_v36 }
  0x6a   :  { %75 = vst.msk [vmem:[#allocation2 + $0x1c0] sm:$0xff] %vm18_vm0, %v1877_v36 }
  0x6b   :  { %76 = vst.msk [vmem:[#allocation2 + $0x1c8] sm:$0xff] %vm18_vm0, %v1877_v36 }
  0x6c   :  { %77 = vst.msk [vmem:[#allocation2 + $0x1d0] sm:$0xff] %vm18_vm0, %v1877_v36 }
  0x6d   :  { %78 = vst.msk [vmem:[#allocation2 + $0x1d8] sm:$0xff] %vm18_vm0, %v1877_v36 }
  0x6e   :  { %79 = vst.msk [vmem:[#allocation2 + $0x1e0] sm:$0xff] %vm18_vm0, %v1877_v36 }
  0x6f   :  { %80 = vst.msk [vmem:[#allocation2 + $0x1e8] sm:$0xff] %vm18_vm0, %v1877_v36 }
  0x70   :  { %81 = vst.msk [vmem:[#allocation2 + $0x1f0] sm:$0xff] %vm18_vm0, %v1877_v36 }
  0x71   :  { %692 = vmatmul.bf16.gmra.mxu0 %v1501_v20  ;;  %772 = vmatmul.bf16.gmra.mxu2 %v1629_v21  ;;  %v1661_v20 = vor.u32 %v1829_v10, %v1660_v9  ;;  %82 = vst.msk [vmem:[#allocation2 + $0x1f8] sm:$0xff] %vm18_vm0, %v1877_v36  ;;  %v119_v9 = vld [vmem:[#allocation2 + $0x120] sm:$0xff] }
  0x72   :  { %861 = vmatmul.bf16.gmra.mxu1 %v1505_v22  ;;  %941 = vmatmul.bf16.gmra.mxu3 %v1633_v23  ;;  %v1537_v23 = vor.u32 %v1796_v11, %v1534_v12 }
  0x81   :  { %697 = vmatmul.bf16.gmra.mxu0 %v1509_v32  ;;  %777 = vmatmul.bf16.gmra.mxu2 %v1637_v33  ;;  %v1799_v32 = vld [vmem:[%s2853_s0 + $0xa4] sm:$0xf0] }
  0x82   :  { %866 = vmatmul.bf16.gmra.mxu1 %v1513_v34  ;;  %946 = vmatmul.bf16.gmra.mxu3 %v1641_v35  ;;  %v1668_v34 = vld [vmem:[%s2853_s0 + $0x1a0] sm:$0xf]  ;;  %v1831_v35 = vld [vmem:[%s2853_s0 + $0x1a4] sm:$0xf0]  ;;  %v1541_v52 = vor.u32 %v1799_v32, %v1540_v31  ;;  %v1832_v32 = vld [vmem:[%s2853_s0 + $0x1b4] sm:$0xf] }
  0x83   :  { %v1669_v53 = vor.u32 %v1831_v35, %v1668_v34 }
  0x91   :  { %702 = vmatmul.bf16.gmra.mxu0 %v1517_v45  ;;  %782 = vmatmul.bf16.gmra.mxu2 %v1645_v46  ;;  %v116_v45 = vld [vmem:[#allocation2 + $0x108] sm:$0xff] }
  0x92   :  { %871 = vmatmul.bf16.gmra.mxu1 %v1521_v47  ;;  %951 = vmatmul.bf16.gmra.mxu3 %v1649_v48 }
  0x9e   :  { %v668_v59 = vpop.f32.mrf.mxu0 }
  0x9f   :  { %v837_v63 = vpop.f32.mrf.mxu1 }
  0xa0   :  { %v838_v0 = vadd.f32 %v837_v63, %v668_v59  ;;  %v1673_v59 = vor.u32 %v1830_v43, %v1670_v44 }
  0xa1   :  { %707 = vmatmul.bf16.gmra.mxu0 %v1525_v57  ;;  %787 = vmatmul.bf16.gmra.mxu2 %v1653_v58  ;;  %v1545_v58 = vor.u32 %v1798_v39, %v1542_v40 }
  0xa2   :  { %v997_v1 = vadd.f32 %v838_v0, %v83_v62  ;;  %876 = vmatmul.bf16.gmra.mxu1 %v1529_v60  ;;  %956 = vmatmul.bf16.gmra.mxu3 %v1657_v61  ;;  %v86_v61 = vld [vmem:[#allocation2 + $0x18] sm:$0xff] }
  0xa4   :  { %1062 = vst.msk [vmem:[#allocation2] sm:$0xff] %vm18_vm0, %v997_v1  ;;  %v748_v2 = vpop.f32.mrf.mxu2  ;;  %v118_v1 = vld [vmem:[#allocation2 + $0x118] sm:$0xff] }
  0xa5   :  { %v917_v3 = vpop.f32.mrf.mxu3 }
  0xa6   :  { %v670_v4 = vpop.f32.mrf.mxu0  ;;  %v918_v33 = vadd.f32 %v917_v3, %v748_v2 }
  0xa7   :  { %v839_v6 = vpop.f32.mrf.mxu1 }
  0xa8   :  { %v840_v38 = vadd.f32 %v839_v6, %v670_v4  ;;  %v1029_v48 = vadd.f32 %v918_v33, %v115_v37  ;;  %v87_v4 = vld [vmem:[#allocation2 + $0x20] sm:$0xff]  ;;  %v1678_v33 = vld [vmem:[%s2853_s0 + $0x1b8] sm:$0xf0] }
  0xaa   :  { %v998_v54 = vadd.f32 %v840_v38, %v84_v41  ;;  %1094 = vst.msk [vmem:[#allocation2 + $0x100] sm:$0xff] %vm18_vm0, %v1029_v48 }
  0xab   :  { %v1129_v13 = vld [vmem:[#allocation2] sm:$0xff] }
  0xac   :  { %v1197_v16 = vadd.f32 %v2244_v5, %v1129_v13  ;;  %v750_v17 = vpop.f32.mrf.mxu2  ;;  %1063 = vst.msk [vmem:[#allocation2 + $0x8] sm:$0xff] %vm18_vm0, %v998_v54  ;;  %v88_v13 = vld [vmem:[#allocation2 + $0x28] sm:$0xff] }
  0xad   :  { %v919_v18 = vpop.f32.mrf.mxu3 }
  0xae   :  { %v1261_v21 = vmax.f32 %v1197_v16, 0.0  ;;  %v673_v22 = vpop.f32.mrf.mxu0  ;;  %v920_v42 = vadd.f32 %v919_v18, %v750_v17  ;;  %v1548_v18 = vld [vmem:[%s2853_s0 + $0xb0] sm:$0xf] }
  0xaf   :  { %v842_v25 = vpop.f32.mrf.mxu1 }
  0xb0   :  { %v1325_v26 = vpack.c.bf16 %v1261_v21, %v1261_v21  ;;  %v843_v46 = vadd.f32 %v842_v25, %v673_v22  ;;  %v1030_v60 = vadd.f32 %v920_v42, %v116_v45  ;;  %v1676_v22 = vld [vmem:[%s2853_s0 + $0x1b0] sm:$0xf] }
  0xb1   :  { %712 = vmatmul.bf16.gmra.mxu0 %v1533_v19  ;;  %792 = vmatmul.bf16.gmra.mxu2 %v1661_v20  ;;  %v1161_v15 = vld [vmem:[#allocation2 + $0x100] sm:$0xff]  ;;  %v1801_v19 = vld [vmem:[%s2853_s0 + $0xb4] sm:$0xf0] }
  0xb2   :  { %1390 = vst.msk [vmem:[%s2855_s3] sm:$0xf] %vm1389_vm1, %v1325_v26  ;;  %881 = vmatmul.bf16.gmra.mxu1 %v1537_v23  ;;  %961 = vmatmul.bf16.gmra.mxu3 %v1665_v24  ;;  %v999_v0 = vadd.f32 %v843_v46, %v85_v49  ;;  %v1229_v20 = vadd.f32 %v2244_v5, %v1161_v15  ;;  %v1833_v23 = vld [vmem:[%s2853_s0 + $0x1b4] sm:$0xf0]  ;;  %v121_v15 = vld [vmem:[#allocation2 + $0x130] sm:$0xff] }
  0xb3   :  { %1095 = vst.msk [vmem:[#allocation2 + $0x108] sm:$0xff] %vm18_vm0, %v1030_v60  ;;  %v1130_v21 = vld [vmem:[#allocation2 + $0x8] sm:$0xff]  ;;  %v1549_v39 = vor.u32 %v1801_v19, %v1548_v18  ;;  %v1677_v40 = vor.u32 %v1833_v23, %v1676_v22 }
  0xb4   :  { %v753_v27 = vpop.f32.mrf.mxu2  ;;  %1064 = vst.msk [vmem:[#allocation2 + $0x10] sm:$0xff] %vm18_vm0, %v999_v0  ;;  %v1198_v24 = vadd.f32 %v2244_v5, %v1130_v21  ;;  %v90_v21 = vld [vmem:[#allocation2 + $0x38] sm:$0xff] }
  0xb5   :  { %v922_v28 = vpop.f32.mrf.mxu3 }
  0xb6   :  { %v675_v29 = vpop.f32.mrf.mxu0  ;;  %v923_v50 = vadd.f32 %v922_v28, %v753_v27  ;;  %v1800_v27 = vld [vmem:[%s2853_s0 + $0xb4] sm:$0xf]  ;;  %v1550_v28 = vld [vmem:[%s2853_s0 + $0xb8] sm:$0xf0]  ;;  %v1262_v34 = vmax.f32 %v1198_v24, 0.0 }
  0xb7   :  { %v844_v30 = vpop.f32.mrf.mxu1  ;;  %v1553_v46 = vor.u32 %v1800_v27, %v1550_v28  ;;  %v1803_v27 = vld [vmem:[%s2853_s0 + $0xc4] sm:$0xf0]  ;;  %v1684_v28 = vld [vmem:[%s2853_s0 + $0x1c0] sm:$0xf] }
  0xb8   :  { %v845_v56 = vadd.f32 %v844_v30, %v675_v29  ;;  %v1031_v3 = vadd.f32 %v923_v50, %v117_v55  ;;  %v1293_v29 = vmax.f32 %v1229_v20, 0.0 }
  0xba   :  { %v1000_v6 = vadd.f32 %v845_v56, %v86_v61  ;;  %1096 = vst.msk [vmem:[#allocation2 + $0x110] sm:$0xff] %vm18_vm0, %v1031_v3  ;;  %v1162_v25 = vld [vmem:[#allocation2 + $0x108] sm:$0xff]  ;;  %v1357_v41 = vpack.c.bf16 %v1293_v29, %v1293_v29 }
  0xbb   :  { %v1230_v30 = vadd.f32 %v2244_v5, %v1162_v25  ;;  %v1131_v31 = vld [vmem:[#allocation2 + $0x10] sm:$0xff]  ;;  %v1835_v29 = vld [vmem:[%s2853_s0 + $0x1c4] sm:$0xf0] }
  0xbc   :  { %v755_v47 = vpop.f32.mrf.mxu2  ;;  %1065 = vst.msk [vmem:[#allocation2 + $0x18] sm:$0xff] %vm18_vm0, %v1000_v6  ;;  %v1199_v35 = vadd.f32 %v2244_v5, %v1131_v31  ;;  %v1802_v31 = vld [vmem:[%s2853_s0 + $0xc4] sm:$0xf] }
  0xbd   :  { %v924_v51 = vpop.f32.mrf.mxu3  ;;  %v1294_v42 = vmax.f32 %v1230_v30, 0.0  ;;  %1422 = vst.msk [vmem:[%s2855_s3 + $0x80] sm:$0xf] %vm1389_vm1, %v1357_v41 }
  0xbe   :  { %v678_v57 = vpop.f32.mrf.mxu0  ;;  %v925_v62 = vadd.f32 %v924_v51, %v755_v47  ;;  %v1326_v47 = vpack.c.bf16 %v1262_v34, %v1262_v34  ;;  %v1263_v48 = vmax.f32 %v1199_v35, 0.0  ;;  %v1686_v34 = vld [vmem:[%s2853_s0 + $0x1c8] sm:$0xf0] }
  0xbf   :  { %v847_v63 = vpop.f32.mrf.mxu1 }
  0xc0   :  { %v848_v2 = vadd.f32 %v847_v63, %v678_v57  ;;  %v1032_v7 = vadd.f32 %v925_v62, %v118_v1  ;;  %1391 = vst.msk [vmem:[%s2855_s3 + $0x4] sm:$0xf] %vm1389_vm1, %v1326_v47  ;;  %v120_v62 = vld [vmem:[#allocation2 + $0x128] sm:$0xff]  ;;  %v91_v47 = vld [vmem:[#allocation2 + $0x40] sm:$0xff] }
  0xc1   :  { %717 = vmatmul.bf16.gmra.mxu0 %v1541_v52  ;;  %797 = vmatmul.bf16.gmra.mxu2 %v1669_v53  ;;  %v1163_v37 = vld [vmem:[#allocation2 + $0x110] sm:$0xff]  ;;  %v1681_v52 = vor.u32 %v1832_v32, %v1678_v33  ;;  %v1358_v53 = vpack.c.bf16 %v1294_v42, %v1294_v42  ;;  %v1558_v32 = vld [vmem:[%s2853_s0 + $0xc8] sm:$0xf0]  ;;  %v1834_v33 = vld [vmem:[%s2853_s0 + $0x1c4] sm:$0xf] }
  0xc2   :  { %886 = vmatmul.bf16.gmra.mxu1 %v1545_v58  ;;  %966 = vmatmul.bf16.gmra.mxu3 %v1673_v59  ;;  %v1001_v36 = vadd.f32 %v848_v2, %v87_v4  ;;  %1097 = vst.msk [vmem:[#allocation2 + $0x118] sm:$0xff] %vm18_vm0, %v1032_v7  ;;  %v1231_v43 = vadd.f32 %v2244_v5, %v1163_v37  ;;  %v89_v7 = vld [vmem:[#allocation2 + $0x30] sm:$0xff]  ;;  %v122_v37 = vld [vmem:[#allocation2 + $0x138] sm:$0xff] }
  0xc3   :  { %v1132_v44 = vld [vmem:[#allocation2 + $0x18] sm:$0xff]  ;;  %v1327_v59 = vpack.c.bf16 %v1263_v48, %v1263_v48  ;;  %1423 = vst.msk [vmem:[%s2855_s3 + $0x84] sm:$0xf] %vm1389_vm1, %v1358_v53 }
  0xc4   :  { %v758_v8 = vpop.f32.mrf.mxu2  ;;  %1066 = vst.msk [vmem:[#allocation2 + $0x20] sm:$0xff] %vm18_vm0, %v1001_v36  ;;  %v1200_v49 = vadd.f32 %v2244_v5, %v1132_v44  ;;  %v1295_v54 = vmax.f32 %v1231_v43, 0.0  ;;  %v1561_v44 = vor.u32 %v1802_v31, %v1558_v32 }
  0xc5   :  { %v927_v10 = vpop.f32.mrf.mxu3  ;;  %1392 = vst.msk [vmem:[%s2855_s3 + $0x8] sm:$0xf] %vm1389_vm1, %v1327_v59 }
  0xc6   :  { %v928_v11 = vadd.f32 %v927_v10, %v758_v8  ;;  %v680_v12 = vpop.f32.mrf.mxu0  ;;  %v1264_v60 = vmax.f32 %v1200_v49, 0.0  ;;  %v1359_v63 = vpack.c.bf16 %v1295_v54, %v1295_v54 }
  0xc7   :  { %v849_v14 = vpop.f32.mrf.mxu1 }
  0xc8   :  { %v1033_v16 = vadd.f32 %v928_v11, %v119_v9  ;;  %v850_v17 = vadd.f32 %v849_v14, %v680_v12  ;;  %v1328_v3 = vpack.c.bf16 %v1264_v60, %v1264_v60  ;;  %1424 = vst.msk [vmem:[%s2855_s3 + $0x88] sm:$0xf] %vm1389_vm1, %v1359_v63 }
  0xc9   :  { %v1164_v50 = vld [vmem:[#allocation2 + $0x118] sm:$0xff] }
  0xca   :  { %1098 = vst.msk [vmem:[#allocation2 + $0x120] sm:$0xff] %vm18_vm0, %v1033_v16  ;;  %v1002_v26 = vadd.f32 %v850_v17, %v88_v13  ;;  %v1232_v55 = vadd.f32 %v2244_v5, %v1164_v50 }
  0xcb   :  { %v1133_v56 = vld [vmem:[#allocation2 + $0x20] sm:$0xff]  ;;  %1393 = vst.msk [vmem:[%s2855_s3 + $0xc] sm:$0xf] %vm1389_vm1, %v1328_v3 }
  0xcc   :  { %1067 = vst.msk [vmem:[#allocation2 + $0x28] sm:$0xff] %vm18_vm0, %v1002_v26  ;;  %v760_v38 = vpop.f32.mrf.mxu2  ;;  %v1201_v61 = vadd.f32 %v2244_v5, %v1133_v56  ;;  %v1296_v0 = vmax.f32 %v1232_v55, 0.0  ;;  %v1556_v26 = vld [vmem:[%s2853_s0 + $0xc0] sm:$0xf] }
  0xcd   :  { %v929_v45 = vpop.f32.mrf.mxu3 }
  0xce   :  { %v683_v51 = vpop.f32.mrf.mxu0  ;;  %v930_v57 = vadd.f32 %v929_v45, %v760_v38  ;;  %v1265_v4 = vmax.f32 %v1201_v61, 0.0  ;;  %v1360_v36 = vpack.c.bf16 %v1296_v0, %v1296_v0  ;;  %v1689_v45 = vor.u32 %v1834_v33, %v1686_v34  ;;  %v123_v0 = vld [vmem:[#allocation2 + $0x140] sm:$0xff] }
  0xcf   :  { %v852_v58 = vpop.f32.mrf.mxu1 }
  0xd0   :  { %v853_v2 = vadd.f32 %v852_v58, %v683_v51  ;;  %v1034_v9 = vadd.f32 %v930_v57, %v120_v62  ;;  %v1329_v10 = vpack.c.bf16 %v1265_v4, %v1265_v4  ;;  %1425 = vst.msk [vmem:[%s2855_s3 + $0x8c] sm:$0xf] %vm1389_vm1, %v1360_v36 }
  0xd1   :  { %v1165_v1 = vld [vmem:[#allocation2 + $0x120] sm:$0xff]  ;;  %722 = vmatmul.bf16.gmra.mxu0 %v1549_v39  ;;  %802 = vmatmul.bf16.gmra.mxu2 %v1677_v40  ;;  %v1557_v39 = vor.u32 %v1803_v27, %v1556_v26  ;;  %v1685_v40 = vor.u32 %v1835_v29, %v1684_v28  ;;  %v124_v26 = vld [vmem:[#allocation2 + $0x148] sm:$0xff] }
  0xd2   :  { %v1233_v6 = vadd.f32 %v2244_v5, %v1165_v1  ;;  %891 = vmatmul.bf16.gmra.mxu1 %v1553_v46  ;;  %971 = vmatmul.bf16.gmra.mxu3 %v1681_v52  ;;  %v1003_v14 = vadd.f32 %v853_v2, %v89_v7  ;;  %1394 = vst.msk [vmem:[%s2855_s3 + $0x10] sm:$0xf] %vm1389_vm1, %v1329_v10  ;;  %v92_v7 = vld [vmem:[#allocation2 + $0x48] sm:$0xff] }
  0xd3   :  { %v1134_v8 = vld [vmem:[#allocation2 + $0x28] sm:$0xff]  ;;  %1099 = vst.msk [vmem:[#allocation2 + $0x128] sm:$0xff] %vm18_vm0, %v1034_v9 }
  0xd4   :  { %v1297_v11 = vmax.f32 %v1233_v6, 0.0  ;;  %v1202_v12 = vadd.f32 %v2244_v5, %v1134_v8  ;;  %v763_v13 = vpop.f32.mrf.mxu2  ;;  %1068 = vst.msk [vmem:[#allocation2 + $0x30] sm:$0xff] %vm18_vm0, %v1003_v14 }
  0xd5   :  { %v932_v16 = vpop.f32.mrf.mxu3 }
  0xd6   :  { %v1361_v17 = vpack.c.bf16 %v1297_v11, %v1297_v11  ;;  %v1266_v18 = vmax.f32 %v1202_v12, 0.0  ;;  %v933_v19 = vadd.f32 %v932_v16, %v763_v13  ;;  %v685_v20 = vpop.f32.mrf.mxu0  ;;  %v1564_v11 = vld [vmem:[%s2853_s0 + $0xd0] sm:$0xf]  ;;  %v1805_v12 = vld [vmem:[%s2853_s0 + $0xd4] sm:$0xf0] }
  0xd7   :  { %v854_v22 = vpop.f32.mrf.mxu1  ;;  %v1692_v13 = vld [vmem:[%s2853_s0 + $0x1d0] sm:$0xf]  ;;  %v1565_v28 = vor.u32 %v1805_v12, %v1564_v11  ;;  %v126_v11 = vld [vmem:[#allocation2 + $0x158] sm:$0xff] }
  0xd8   :  { %1426 = vst.msk [vmem:[%s2855_s3 + $0x90] sm:$0xf] %vm1389_vm1, %v1361_v17  ;;  %v1330_v23 = vpack.c.bf16 %v1266_v18, %v1266_v18  ;;  %v1035_v24 = vadd.f32 %v933_v19, %v121_v15  ;;  %v855_v25 = vadd.f32 %v854_v22, %v685_v20  ;;  %v1837_v15 = vld [vmem:[%s2853_s0 + $0x1d4] sm:$0xf0]  ;;  %v1804_v18 = vld [vmem:[%s2853_s0 + $0xd4] sm:$0xf] }
  0xd9   :  { %v1566_v19 = vld [vmem:[%s2853_s0 + $0xd8] sm:$0xf0]  ;;  %v1693_v29 = vor.u32 %v1837_v15, %v1692_v13 }
  0xda   :  { %1395 = vst.msk [vmem:[%s2855_s3 + $0x14] sm:$0xf] %vm1389_vm1, %v1330_v23  ;;  %v1004_v30 = vadd.f32 %v855_v25, %v90_v21  ;;  %v1166_v41 = vld [vmem:[#allocation2 + $0x128] sm:$0xff]  ;;  %v1836_v21 = vld [vmem:[%s2853_s0 + $0x1d4] sm:$0xf] }
  0xdb   :  { %1100 = vst.msk [vmem:[#allocation2 + $0x130] sm:$0xff] %vm18_vm0, %v1035_v24  ;;  %v1234_v46 = vadd.f32 %v2244_v5, %v1166_v41  ;;  %v1135_v49 = vld [vmem:[#allocation2 + $0x30] sm:$0xff]  ;;  %v1694_v22 = vld [vmem:[%s2853_s0 + $0x1d8] sm:$0xf0] }
  0xdc   :  { %1069 = vst.msk [vmem:[#allocation2 + $0x38] sm:$0xff] %vm18_vm0, %v1004_v30  ;;  %v765_v35 = vpop.f32.mrf.mxu2  ;;  %v1203_v53 = vadd.f32 %v2244_v5, %v1135_v49  ;;  %v1569_v30 = vor.u32 %v1804_v18, %v1566_v19  ;;  %v125_v49 = vld [vmem:[#allocation2 + $0x150] sm:$0xff] }
  0xdd   :  { %v934_v38 = vpop.f32.mrf.mxu3  ;;  %v1298_v52 = vmax.f32 %v1234_v46, 0.0 }
  0xde   :  { %v935_v42 = vadd.f32 %v934_v38, %v765_v35  ;;  %v688_v43 = vpop.f32.mrf.mxu0  ;;  %v1267_v57 = vmax.f32 %v1203_v53, 0.0  ;;  %v1697_v35 = vor.u32 %v1836_v21, %v1694_v22  ;;  %v95_v21 = vld [vmem:[#allocation2 + $0x60] sm:$0xff] }
  0xdf   :  { %v857_v48 = vpop.f32.mrf.mxu1  ;;  %v1362_v56 = vpack.c.bf16 %v1298_v52, %v1298_v52 }
  0xe0   :  { %v1036_v50 = vadd.f32 %v935_v42, %v122_v37  ;;  %v858_v51 = vadd.f32 %v857_v48, %v688_v43  ;;  %v1331_v62 = vpack.c.bf16 %v1267_v57, %v1267_v57  ;;  %v93_v37 = vld [vmem:[#allocation2 + $0x50] sm:$0xff] }
  0xe1   :  { %727 = vmatmul.bf16.gmra.mxu0 %v1557_v39  ;;  %807 = vmatmul.bf16.gmra.mxu2 %v1685_v40  ;;  %1427 = vst.msk [vmem:[%s2855_s3 + $0x94] sm:$0xf] %vm1389_vm1, %v1362_v56 }
  0xe2   :  { %v1167_v54 = vld [vmem:[#allocation2 + $0x130] sm:$0xff]  ;;  %1101 = vst.msk [vmem:[#allocation2 + $0x138] sm:$0xff] %vm18_vm0, %v1036_v50  ;;  %v1005_v55 = vadd.f32 %v858_v51, %v91_v47  ;;  %896 = vmatmul.bf16.gmra.mxu1 %v1561_v44  ;;  %976 = vmatmul.bf16.gmra.mxu3 %v1689_v45 }
  0xe3   :  { %v1235_v58 = vadd.f32 %v2244_v5, %v1167_v54  ;;  %v1136_v59 = vld [vmem:[#allocation2 + $0x38] sm:$0xff]  ;;  %1396 = vst.msk [vmem:[%s2855_s3 + $0x18] sm:$0xf] %vm1389_vm1, %v1331_v62  ;;  %v1700_v62 = vld [vmem:[%s2853_s0 + $0x1e0] sm:$0xf] }
  0xe4   :  { %v1204_v60 = vadd.f32 %v2244_v5, %v1136_v59  ;;  %1070 = vst.msk [vmem:[#allocation2 + $0x40] sm:$0xff] %vm18_vm0, %v1005_v55  ;;  %v768_v61 = vpop.f32.mrf.mxu2  ;;  %v94_v55 = vld [vmem:[#allocation2 + $0x58] sm:$0xff] }
  0xe5   :  { %v1299_v63 = vmax.f32 %v1235_v58, 0.0  ;;  %v937_v1 = vpop.f32.mrf.mxu3 }
  0xe6   :  { %v1268_v2 = vmax.f32 %v1204_v60, 0.0  ;;  %v938_v3 = vadd.f32 %v937_v1, %v768_v61  ;;  %v690_v4 = vpop.f32.mrf.mxu0  ;;  %v1572_v60 = vld [vmem:[%s2853_s0 + $0xe0] sm:$0xf]  ;;  %v1807_v61 = vld [vmem:[%s2853_s0 + $0xe4] sm:$0xf0] }
  0xe7   :  { %v1363_v6 = vpack.c.bf16 %v1299_v63, %v1299_v63  ;;  %v859_v36 = vpop.f32.mrf.mxu1  ;;  %v1839_v63 = vld [vmem:[%s2853_s0 + $0x1e4] sm:$0xf0]  ;;  %v1573_v13 = vor.u32 %v1807_v61, %v1572_v60 }
  0xe8   :  { %v1332_v8 = vpack.c.bf16 %v1268_v2, %v1268_v2  ;;  %v1037_v9 = vadd.f32 %v938_v3, %v123_v0  ;;  %v860_v10 = vadd.f32 %v859_v36, %v690_v4  ;;  %v1806_v0 = vld [vmem:[%s2853_s0 + $0xe4] sm:$0xf]  ;;  %v1574_v3 = vld [vmem:[%s2853_s0 + $0xe8] sm:$0xf0] }
  0xe9   :  { %1428 = vst.msk [vmem:[%s2855_s3 + $0x98] sm:$0xf] %vm1389_vm1, %v1363_v6  ;;  %v1168_v14 = vld [vmem:[#allocation2 + $0x138] sm:$0xff]  ;;  %v1702_v36 = vld [vmem:[%s2853_s0 + $0x1e8] sm:$0xf0]  ;;  %v1577_v18 = vor.u32 %v1806_v0, %v1574_v3 }
  0xea   :  { %1397 = vst.msk [vmem:[%s2855_s3 + $0x1c] sm:$0xf] %vm1389_vm1, %v1332_v8  ;;  %v1236_v16 = vadd.f32 %v2244_v5, %v1168_v14  ;;  %v1006_v17 = vadd.f32 %v860_v10, %v92_v7  ;;  %v1838_v7 = vld [vmem:[%s2853_s0 + $0x1e4] sm:$0xf]  ;;  %v1701_v14 = vor.u32 %v1839_v63, %v1700_v62  ;;  %v128_v60 = vld [vmem:[#allocation2 + $0x168] sm:$0xff] }
  0xeb   :  { %v1137_v20 = vld [vmem:[#allocation2 + $0x40] sm:$0xff]  ;;  %1102 = vst.msk [vmem:[#allocation2 + $0x140] sm:$0xff] %vm18_vm0, %v1037_v9  ;;  %v1705_v19 = vor.u32 %v1838_v7, %v1702_v36  ;;  %v97_v7 = vld [vmem:[#allocation2 + $0x70] sm:$0xff] }
  0xec   :  { %v1300_v23 = vmax.f32 %v1236_v16, 0.0  ;;  %v1205_v24 = vadd.f32 %v2244_v5, %v1137_v20  ;;  %1071 = vst.msk [vmem:[#allocation2 + $0x48] sm:$0xff] %vm18_vm0, %v1006_v17  ;;  %v770_v25 = vpop.f32.mrf.mxu2 }
  0xed   :  { %v939_v27 = vpop.f32.mrf.mxu3 }
  0xee   :  { %v1364_v31 = vpack.c.bf16 %v1300_v23, %v1300_v23  ;;  %v1269_v32 = vmax.f32 %v1205_v24, 0.0  ;;  %v940_v33 = vadd.f32 %v939_v27, %v770_v25  ;;  %v693_v34 = vpop.f32.mrf.mxu0 }
  0xef   :  { %v862_v38 = vpop.f32.mrf.mxu1 }
  0xf0   :  { %1429 = vst.msk [vmem:[%s2855_s3 + $0x9c] sm:$0xf] %vm1389_vm1, %v1364_v31  ;;  %v1333_v39 = vpack.c.bf16 %v1269_v32, %v1269_v32  ;;  %v1038_v40 = vadd.f32 %v940_v33, %v124_v26  ;;  %v863_v41 = vadd.f32 %v862_v38, %v693_v34  ;;  %v127_v33 = vld [vmem:[#allocation2 + $0x160] sm:$0xff] }
  0xf1   :  { %732 = vmatmul.bf16.gmra.mxu0 %v1565_v28  ;;  %812 = vmatmul.bf16.gmra.mxu2 %v1693_v29 }
  0xf2   :  { %1398 = vst.msk [vmem:[%s2855_s3 + $0x20] sm:$0xf] %vm1389_vm1, %v1333_v39  ;;  %v1169_v42 = vld [vmem:[#allocation2 + $0x140] sm:$0xff]  ;;  %v1007_v43 = vadd.f32 %v863_v41, %v93_v37  ;;  %901 = vmatmul.bf16.gmra.mxu1 %v1569_v30  ;;  %981 = vmatmul.bf16.gmra.mxu3 %v1697_v35 }
  0xf3   :  { %v1237_v44 = vadd.f32 %v2244_v5, %v1169_v42  ;;  %v1138_v45 = vld [vmem:[#allocation2 + $0x48] sm:$0xff]  ;;  %1103 = vst.msk [vmem:[#allocation2 + $0x148] sm:$0xff] %vm18_vm0, %v1038_v40 }
  0xf4   :  { %v1206_v46 = vadd.f32 %v2244_v5, %v1138_v45  ;;  %1072 = vst.msk [vmem:[#allocation2 + $0x50] sm:$0xff] %vm18_vm0, %v1007_v43  ;;  %v773_v47 = vpop.f32.mrf.mxu2  ;;  %v96_v40 = vld [vmem:[#allocation2 + $0x68] sm:$0xff]  ;;  %v1580_v45 = vld [vmem:[%s2853_s0 + $0xf0] sm:$0xf] }
  0xf5   :  { %v1301_v48 = vmax.f32 %v1237_v44, 0.0  ;;  %v942_v50 = vpop.f32.mrf.mxu3 }
  0xf6   :  { %v1270_v51 = vmax.f32 %v1206_v46, 0.0  ;;  %v943_v52 = vadd.f32 %v942_v50, %v773_v47  ;;  %v695_v53 = vpop.f32.mrf.mxu0  ;;  %v1809_v46 = vld [vmem:[%s2853_s0 + $0xf4] sm:$0xf0]  ;;  %v1708_v47 = vld [vmem:[%s2853_s0 + $0x1f0] sm:$0xf] }
  0xf7   :  { %v1365_v54 = vpack.c.bf16 %v1301_v48, %v1301_v48  ;;  %v864_v56 = vpop.f32.mrf.mxu1  ;;  %v1841_v48 = vld [vmem:[%s2853_s0 + $0x1f4] sm:$0xf0]  ;;  %v1581_v62 = vor.u32 %v1809_v46, %v1580_v45 }
  0xf8   :  { %v1334_v57 = vpack.c.bf16 %v1270_v51, %v1270_v51  ;;  %v1039_v58 = vadd.f32 %v943_v52, %v125_v49  ;;  %v865_v59 = vadd.f32 %v864_v56, %v695_v53  ;;  %v1808_v49 = vld [vmem:[%s2853_s0 + $0xf4] sm:$0xf]  ;;  %v1582_v52 = vld [vmem:[%s2853_s0 + $0xf8] sm:$0xf0]  ;;  %v1709_v63 = vor.u32 %v1841_v48, %v1708_v47 }
  0xf9   :  { %1430 = vst.msk [vmem:[%s2855_s3 + $0xa0] sm:$0xf] %vm1389_vm1, %v1365_v54  ;;  %v1710_v56 = vld [vmem:[%s2853_s0 + $0x1f8] sm:$0xf0]  ;;  %v1585_v3 = vor.u32 %v1808_v49, %v1582_v52 }
  0xfa   :  { %1399 = vst.msk [vmem:[%s2855_s3 + $0x24] sm:$0xf] %vm1389_vm1, %v1334_v57  ;;  %v1170_v1 = vld [vmem:[#allocation2 + $0x148] sm:$0xff]  ;;  %v1008_v2 = vadd.f32 %v865_v59, %v94_v55  ;;  %v1840_v55 = vld [vmem:[%s2853_s0 + $0x1f4] sm:$0xf] }
  0xfb   :  { %v1238_v4 = vadd.f32 %v2244_v5, %v1170_v1  ;;  %v1139_v6 = vld [vmem:[#allocation2 + $0x50] sm:$0xff]  ;;  %1104 = vst.msk [vmem:[#allocation2 + $0x150] sm:$0xff] %vm18_vm0, %v1039_v58 }
  0xfc   :  { %v1207_v8 = vadd.f32 %v2244_v5, %v1139_v6  ;;  %1073 = vst.msk [vmem:[#allocation2 + $0x58] sm:$0xff] %vm18_vm0, %v1008_v2  ;;  %v775_v9 = vpop.f32.mrf.mxu2 }
  0xfd   :  { %v1302_v10 = vmax.f32 %v1238_v4, 0.0  ;;  %v944_v12 = vpop.f32.mrf.mxu3  ;;  %v1713_v4 = vor.u32 %v1840_v55, %v1710_v56  ;;  %v131_v55 = vld [vmem:[#allocation2 + $0x180] sm:$0xff] }
  0xfe   :  { %v1271_v15 = vmax.f32 %v1207_v8, 0.0  ;;  %v945_v16 = vadd.f32 %v944_v12, %v775_v9  ;;  %v698_v17 = vpop.f32.mrf.mxu0 }
  0xff   :  { %v1366_v20 = vpack.c.bf16 %v1302_v10, %v1302_v10  ;;  %v867_v22 = vpop.f32.mrf.mxu1 }
 0x100   :  { %v1335_v23 = vpack.c.bf16 %v1271_v15, %v1271_v15  ;;  %v1040_v24 = vadd.f32 %v945_v16, %v126_v11  ;;  %v868_v25 = vadd.f32 %v867_v22, %v698_v17 }
 0x101   :  { %1431 = vst.msk [vmem:[%s2855_s3 + $0xa4] sm:$0xf] %vm1389_vm1, %v1366_v20  ;;  %737 = vmatmul.bf16.gmra.mxu0 %v1573_v13  ;;  %817 = vmatmul.bf16.gmra.mxu2 %v1701_v14 }
 0x102   :  { %1400 = vst.msk [vmem:[%s2855_s3 + $0x28] sm:$0xf] %vm1389_vm1, %v1335_v23  ;;  %v1171_v26 = vld [vmem:[#allocation2 + $0x150] sm:$0xff]  ;;  %v1009_v27 = vadd.f32 %v868_v25, %v95_v21  ;;  %906 = vmatmul.bf16.gmra.mxu1 %v1577_v18  ;;  %986 = vmatmul.bf16.gmra.mxu3 %v1705_v19 }
 0x103   :  { %v1239_v28 = vadd.f32 %v2244_v5, %v1171_v26  ;;  %v1140_v29 = vld [vmem:[#allocation2 + $0x58] sm:$0xff]  ;;  %1105 = vst.msk [vmem:[#allocation2 + $0x158] sm:$0xff] %vm18_vm0, %v1040_v24  ;;  %v129_v18 = vld [vmem:[#allocation2 + $0x170] sm:$0xff] }
 0x104   :  { %v1208_v30 = vadd.f32 %v2244_v5, %v1140_v29  ;;  %1074 = vst.msk [vmem:[#allocation2 + $0x60] sm:$0xff] %vm18_vm0, %v1009_v27  ;;  %v778_v31 = vpop.f32.mrf.mxu2  ;;  %v98_v24 = vld [vmem:[#allocation2 + $0x78] sm:$0xff] }
 0x105   :  { %v1303_v32 = vmax.f32 %v1239_v28, 0.0  ;;  %v947_v34 = vpop.f32.mrf.mxu3 }
 0x106   :  { %v1272_v35 = vmax.f32 %v1208_v30, 0.0  ;;  %v948_v37 = vadd.f32 %v947_v34, %v778_v31  ;;  %v700_v38 = vpop.f32.mrf.mxu0 }
 0x107   :  { %v1367_v39 = vpack.c.bf16 %v1303_v32, %v1303_v32  ;;  %v869_v41 = vpop.f32.mrf.mxu1 }
 0x108   :  { %v1336_v42 = vpack.c.bf16 %v1272_v35, %v1272_v35  ;;  %v1041_v43 = vadd.f32 %v948_v37, %v127_v33  ;;  %v870_v44 = vadd.f32 %v869_v41, %v700_v38  ;;  %v130_v37 = vld [vmem:[#allocation2 + $0x178] sm:$0xff] }
 0x109   :  { %1432 = vst.msk [vmem:[%s2855_s3 + $0xa8] sm:$0xf] %vm1389_vm1, %v1367_v39 }
 0x10a   :  { %1401 = vst.msk [vmem:[%s2855_s3 + $0x2c] sm:$0xf] %vm1389_vm1, %v1336_v42  ;;  %v1172_v50 = vld [vmem:[#allocation2 + $0x158] sm:$0xff]  ;;  %v1010_v51 = vadd.f32 %v870_v44, %v96_v40 }
 0x10b   :  { %v1240_v53 = vadd.f32 %v2244_v5, %v1172_v50  ;;  %v1141_v54 = vld [vmem:[#allocation2 + $0x60] sm:$0xff]  ;;  %1106 = vst.msk [vmem:[#allocation2 + $0x160] sm:$0xff] %vm18_vm0, %v1041_v43 }
 0x10c   :  { %v1209_v57 = vadd.f32 %v2244_v5, %v1141_v54  ;;  %1075 = vst.msk [vmem:[#allocation2 + $0x68] sm:$0xff] %vm18_vm0, %v1010_v51  ;;  %v780_v58 = vpop.f32.mrf.mxu2  ;;  %v99_v43 = vld [vmem:[#allocation2 + $0x80] sm:$0xff] }
 0x10d   :  { %v1304_v59 = vmax.f32 %v1240_v53, 0.0  ;;  %v949_v61 = vpop.f32.mrf.mxu3 }
 0x10e   :  { %v1273_v0 = vmax.f32 %v1209_v57, 0.0  ;;  %v950_v1 = vadd.f32 %v949_v61, %v780_v58  ;;  %v703_v2 = vpop.f32.mrf.mxu0  ;;  %v100_v61 = vld [vmem:[#allocation2 + $0x88] sm:$0xff] }
 0x10f   :  { %v1368_v6 = vpack.c.bf16 %v1304_v59, %v1304_v59  ;;  %v872_v36 = vpop.f32.mrf.mxu1 }
 0x110   :  { %v1337_v8 = vpack.c.bf16 %v1273_v0, %v1273_v0  ;;  %v1042_v9 = vadd.f32 %v950_v1, %v128_v60  ;;  %v873_v10 = vadd.f32 %v872_v36, %v703_v2 }
 0x111   :  { %1433 = vst.msk [vmem:[%s2855_s3 + $0xac] sm:$0xf] %vm1389_vm1, %v1368_v6  ;;  %742 = vmatmul.bf16.gmra.mxu0 %v1581_v62  ;;  %822 = vmatmul.bf16.gmra.mxu2 %v1709_v63 }
 0x112   :  { %1402 = vst.msk [vmem:[%s2855_s3 + $0x30] sm:$0xf] %vm1389_vm1, %v1337_v8  ;;  %v1173_v11 = vld [vmem:[#allocation2 + $0x160] sm:$0xff]  ;;  %v1011_v12 = vadd.f32 %v873_v10, %v97_v7  ;;  %911 = vmatmul.bf16.gmra.mxu1 %v1585_v3  ;;  %991 = vmatmul.bf16.gmra.mxu3 %v1713_v4 }
 0x113   :  { %v1241_v13 = vadd.f32 %v2244_v5, %v1173_v11  ;;  %v1142_v14 = vld [vmem:[#allocation2 + $0x68] sm:$0xff]  ;;  %1107 = vst.msk [vmem:[#allocation2 + $0x168] sm:$0xff] %vm18_vm0, %v1042_v9 }
 0x114   :  { %v1210_v15 = vadd.f32 %v2244_v5, %v1142_v14  ;;  %1076 = vst.msk [vmem:[#allocation2 + $0x70] sm:$0xff] %vm18_vm0, %v1011_v12  ;;  %v783_v16 = vpop.f32.mrf.mxu2  ;;  %v132_v9 = vld [vmem:[#allocation2 + $0x188] sm:$0xff] }
 0x115   :  { %v1305_v17 = vmax.f32 %v1241_v13, 0.0  ;;  %v952_v19 = vpop.f32.mrf.mxu3 }
 0x116   :  { %v1274_v20 = vmax.f32 %v1210_v15, 0.0  ;;  %v953_v21 = vadd.f32 %v952_v19, %v783_v16  ;;  %v705_v22 = vpop.f32.mrf.mxu0  ;;  %v101_v15 = vld [vmem:[#allocation2 + $0x90] sm:$0xff] }
 0x117   :  { %v1369_v23 = vpack.c.bf16 %v1305_v17, %v1305_v17  ;;  %v874_v25 = vpop.f32.mrf.mxu1 }
 0x118   :  { %v1338_v26 = vpack.c.bf16 %v1274_v20, %v1274_v20  ;;  %v1043_v27 = vadd.f32 %v953_v21, %v129_v18  ;;  %v875_v28 = vadd.f32 %v874_v25, %v705_v22  ;;  %v2666_v21 = vld [vmem:[%s2854_s2] ss:$0 sm:$0xff] }
 0x119   :  { %1434 = vst.msk [vmem:[%s2855_s3 + $0xb0] sm:$0xf] %vm1389_vm1, %v1369_v23 }
 0x11a   :  { %1403 = vst.msk [vmem:[%s2855_s3 + $0x34] sm:$0xf] %vm1389_vm1, %v1338_v26  ;;  %v1174_v29 = vld [vmem:[#allocation2 + $0x168] sm:$0xff]  ;;  %v1012_v30 = vadd.f32 %v875_v28, %v98_v24 }
 0x11b   :  { %v1242_v31 = vadd.f32 %v2244_v5, %v1174_v29  ;;  %v1143_v32 = vld [vmem:[#allocation2 + $0x70] sm:$0xff]  ;;  %1108 = vst.msk [vmem:[#allocation2 + $0x170] sm:$0xff] %vm18_vm0, %v1043_v27 }
 0x11c   :  { %v1211_v33 = vadd.f32 %v2244_v5, %v1143_v32  ;;  %1077 = vst.msk [vmem:[#allocation2 + $0x78] sm:$0xff] %vm18_vm0, %v1012_v30  ;;  %v785_v34 = vpop.f32.mrf.mxu2  ;;  %v133_v27 = vld [vmem:[#allocation2 + $0x190] sm:$0xff] }
 0x11d   :  { %v1306_v35 = vmax.f32 %v1242_v31, 0.0  ;;  %v954_v38 = vpop.f32.mrf.mxu3 }
 0x11e   :  { %v1275_v39 = vmax.f32 %v1211_v33, 0.0  ;;  %v955_v40 = vadd.f32 %v954_v38, %v785_v34  ;;  %v708_v41 = vpop.f32.mrf.mxu0  ;;  %v102_v33 = vld [vmem:[#allocation2 + $0x98] sm:$0xff] }
 0x11f   :  { %v1370_v42 = vpack.c.bf16 %v1306_v35, %v1306_v35  ;;  %v877_v44 = vpop.f32.mrf.mxu1 }
 0x120   :  { %v1339_v45 = vpack.c.bf16 %v1275_v39, %v1275_v39  ;;  %v1044_v46 = vadd.f32 %v955_v40, %v130_v37  ;;  %v878_v47 = vadd.f32 %v877_v44, %v708_v41 }
 0x121   :  { %1435 = vst.msk [vmem:[%s2855_s3 + $0xb4] sm:$0xf] %vm1389_vm1, %v1370_v42 }
 0x122   :  { %1404 = vst.msk [vmem:[%s2855_s3 + $0x38] sm:$0xf] %vm1389_vm1, %v1339_v45  ;;  %v1175_v48 = vld [vmem:[#allocation2 + $0x170] sm:$0xff]  ;;  %v1013_v49 = vadd.f32 %v878_v47, %v99_v43 }
 0x123   :  { %v1243_v50 = vadd.f32 %v2244_v5, %v1175_v48  ;;  %v1144_v51 = vld [vmem:[#allocation2 + $0x78] sm:$0xff]  ;;  %1109 = vst.msk [vmem:[#allocation2 + $0x178] sm:$0xff] %vm18_vm0, %v1044_v46 }
 0x124   :  { %v1212_v52 = vadd.f32 %v2244_v5, %v1144_v51  ;;  %1078 = vst.msk [vmem:[#allocation2 + $0x80] sm:$0xff] %vm18_vm0, %v1013_v49  ;;  %v788_v53 = vpop.f32.mrf.mxu2  ;;  %v134_v46 = vld [vmem:[#allocation2 + $0x198] sm:$0xff] }
 0x125   :  { %v1307_v54 = vmax.f32 %v1243_v50, 0.0  ;;  %v957_v56 = vpop.f32.mrf.mxu3 }
 0x126   :  { %v1276_v57 = vmax.f32 %v1212_v52, 0.0  ;;  %v958_v58 = vadd.f32 %v957_v56, %v788_v53  ;;  %v710_v59 = vpop.f32.mrf.mxu0  ;;  %v103_v52 = vld [vmem:[#allocation2 + $0xa0] sm:$0xff] }
 0x127   :  { %v1371_v60 = vpack.c.bf16 %v1307_v54, %v1307_v54  ;;  %v879_v62 = vpop.f32.mrf.mxu1 }
 0x128   :  { %v1340_v63 = vpack.c.bf16 %v1276_v57, %v1276_v57  ;;  %v1045_v0 = vadd.f32 %v958_v58, %v131_v55  ;;  %v880_v1 = vadd.f32 %v879_v62, %v710_v59 }
 0x129   :  { %1436 = vst.msk [vmem:[%s2855_s3 + $0xb8] sm:$0xf] %vm1389_vm1, %v1371_v60 }
 0x12a   :  { %1405 = vst.msk [vmem:[%s2855_s3 + $0x3c] sm:$0xf] %vm1389_vm1, %v1340_v63  ;;  %v1176_v2 = vld [vmem:[#allocation2 + $0x178] sm:$0xff]  ;;  %v1014_v3 = vadd.f32 %v880_v1, %v100_v61 }
 0x12b   :  { %v1244_v4 = vadd.f32 %v2244_v5, %v1176_v2  ;;  %v1145_v6 = vld [vmem:[#allocation2 + $0x80] sm:$0xff]  ;;  %1110 = vst.msk [vmem:[#allocation2 + $0x180] sm:$0xff] %vm18_vm0, %v1045_v0 }
 0x12c   :  { %v1213_v7 = vadd.f32 %v2244_v5, %v1145_v6  ;;  %1079 = vst.msk [vmem:[#allocation2 + $0x88] sm:$0xff] %vm18_vm0, %v1014_v3  ;;  %v790_v36 = vpop.f32.mrf.mxu2  ;;  %v135_v0 = vld [vmem:[#allocation2 + $0x1a0] sm:$0xff] }
 0x12d   :  { %v1308_v8 = vmax.f32 %v1244_v4, 0.0  ;;  %v959_v10 = vpop.f32.mrf.mxu3 }
 0x12e   :  { %v1277_v11 = vmax.f32 %v1213_v7, 0.0  ;;  %v960_v12 = vadd.f32 %v959_v10, %v790_v36  ;;  %v713_v13 = vpop.f32.mrf.mxu0  ;;  %v104_v7 = vld [vmem:[#allocation2 + $0xa8] sm:$0xff] }
 0x12f   :  { %v1372_v14 = vpack.c.bf16 %v1308_v8, %v1308_v8  ;;  %v882_v16 = vpop.f32.mrf.mxu1 }
 0x130   :  { %v1341_v17 = vpack.c.bf16 %v1277_v11, %v1277_v11  ;;  %v1046_v18 = vadd.f32 %v960_v12, %v132_v9  ;;  %v883_v19 = vadd.f32 %v882_v16, %v713_v13 }
 0x131   :  { %1437 = vst.msk [vmem:[%s2855_s3 + $0xbc] sm:$0xf] %vm1389_vm1, %v1372_v14 }
 0x132   :  { %1406 = vst.msk [vmem:[%s2855_s3 + $0x40] sm:$0xf] %vm1389_vm1, %v1341_v17  ;;  %v1177_v5 = vld [vmem:[#allocation2 + $0x180] sm:$0xff]  ;;  %v1015_v20 = vadd.f32 %v883_v19, %v101_v15 }
 0x133   :  { %v1245_v22 = vadd.f32 %v2666_v21, %v1177_v5  ;;  %v1146_v23 = vld [vmem:[#allocation2 + $0x88] sm:$0xff]  ;;  %1111 = vst.msk [vmem:[#allocation2 + $0x188] sm:$0xff] %vm18_vm0, %v1046_v18 }
 0x134   :  { %v1214_v24 = vadd.f32 %v2666_v21, %v1146_v23  ;;  %1080 = vst.msk [vmem:[#allocation2 + $0x90] sm:$0xff] %vm18_vm0, %v1015_v20  ;;  %v793_v25 = vpop.f32.mrf.mxu2  ;;  %v136_v18 = vld [vmem:[#allocation2 + $0x1a8] sm:$0xff] }
 0x135   :  { %v1309_v26 = vmax.f32 %v1245_v22, 0.0  ;;  %v962_v28 = vpop.f32.mrf.mxu3 }
 0x136   :  { %v1278_v29 = vmax.f32 %v1214_v24, 0.0  ;;  %v963_v30 = vadd.f32 %v962_v28, %v793_v25  ;;  %v715_v31 = vpop.f32.mrf.mxu0  ;;  %v105_v24 = vld [vmem:[#allocation2 + $0xb0] sm:$0xff] }
 0x137   :  { %v1373_v32 = vpack.c.bf16 %v1309_v26, %v1309_v26  ;;  %v884_v34 = vpop.f32.mrf.mxu1 }
 0x138   :  { %v1342_v35 = vpack.c.bf16 %v1278_v29, %v1278_v29  ;;  %v1047_v37 = vadd.f32 %v963_v30, %v133_v27  ;;  %v885_v38 = vadd.f32 %v884_v34, %v715_v31 }
 0x139   :  { %1438 = vst.msk [vmem:[%s2855_s3 + $0xc0] sm:$0xf] %vm1389_vm1, %v1373_v32 }
 0x13a   :  { %1407 = vst.msk [vmem:[%s2855_s3 + $0x44] sm:$0xf] %vm1389_vm1, %v1342_v35  ;;  %v1178_v39 = vld [vmem:[#allocation2 + $0x188] sm:$0xff]  ;;  %v1016_v40 = vadd.f32 %v885_v38, %v102_v33 }
 0x13b   :  { %v1246_v41 = vadd.f32 %v2666_v21, %v1178_v39  ;;  %v1147_v42 = vld [vmem:[#allocation2 + $0x90] sm:$0xff]  ;;  %1112 = vst.msk [vmem:[#allocation2 + $0x190] sm:$0xff] %vm18_vm0, %v1047_v37 }
 0x13c   :  { %v1215_v43 = vadd.f32 %v2666_v21, %v1147_v42  ;;  %1081 = vst.msk [vmem:[#allocation2 + $0x98] sm:$0xff] %vm18_vm0, %v1016_v40  ;;  %v795_v44 = vpop.f32.mrf.mxu2  ;;  %v137_v37 = vld [vmem:[#allocation2 + $0x1b0] sm:$0xff] }
 0x13d   :  { %v1310_v45 = vmax.f32 %v1246_v41, 0.0  ;;  %v964_v47 = vpop.f32.mrf.mxu3 }
 0x13e   :  { %v1279_v48 = vmax.f32 %v1215_v43, 0.0  ;;  %v965_v49 = vadd.f32 %v964_v47, %v795_v44  ;;  %v718_v50 = vpop.f32.mrf.mxu0  ;;  %v106_v43 = vld [vmem:[#allocation2 + $0xb8] sm:$0xff] }
 0x13f   :  { %v1374_v51 = vpack.c.bf16 %v1310_v45, %v1310_v45  ;;  %v887_v53 = vpop.f32.mrf.mxu1 }
 0x140   :  { %v1343_v54 = vpack.c.bf16 %v1279_v48, %v1279_v48  ;;  %v1048_v55 = vadd.f32 %v965_v49, %v134_v46  ;;  %v888_v56 = vadd.f32 %v887_v53, %v718_v50 }
 0x141   :  { %1439 = vst.msk [vmem:[%s2855_s3 + $0xc4] sm:$0xf] %vm1389_vm1, %v1374_v51 }
 0x142   :  { %1408 = vst.msk [vmem:[%s2855_s3 + $0x48] sm:$0xf] %vm1389_vm1, %v1343_v54  ;;  %v1179_v57 = vld [vmem:[#allocation2 + $0x190] sm:$0xff]  ;;  %v1017_v58 = vadd.f32 %v888_v56, %v103_v52 }
 0x143   :  { %v1247_v59 = vadd.f32 %v2666_v21, %v1179_v57  ;;  %v1148_v60 = vld [vmem:[#allocation2 + $0x98] sm:$0xff]  ;;  %1113 = vst.msk [vmem:[#allocation2 + $0x198] sm:$0xff] %vm18_vm0, %v1048_v55 }
 0x144   :  { %v1216_v61 = vadd.f32 %v2666_v21, %v1148_v60  ;;  %1082 = vst.msk [vmem:[#allocation2 + $0xa0] sm:$0xff] %vm18_vm0, %v1017_v58  ;;  %v798_v62 = vpop.f32.mrf.mxu2  ;;  %v138_v55 = vld [vmem:[#allocation2 + $0x1b8] sm:$0xff] }
 0x145   :  { %v1311_v63 = vmax.f32 %v1247_v59, 0.0  ;;  %v967_v1 = vpop.f32.mrf.mxu3 }
 0x146   :  { %v1280_v2 = vmax.f32 %v1216_v61, 0.0  ;;  %v968_v3 = vadd.f32 %v967_v1, %v798_v62  ;;  %v720_v4 = vpop.f32.mrf.mxu0  ;;  %v107_v61 = vld [vmem:[#allocation2 + $0xc0] sm:$0xff] }
 0x147   :  { %v1375_v6 = vpack.c.bf16 %v1311_v63, %v1311_v63  ;;  %v889_v36 = vpop.f32.mrf.mxu1 }
 0x148   :  { %v1344_v8 = vpack.c.bf16 %v1280_v2, %v1280_v2  ;;  %v1049_v9 = vadd.f32 %v968_v3, %v135_v0  ;;  %v890_v10 = vadd.f32 %v889_v36, %v720_v4 }
 0x149   :  { %1440 = vst.msk [vmem:[%s2855_s3 + $0xc8] sm:$0xf] %vm1389_vm1, %v1375_v6 }
 0x14a   :  { %1409 = vst.msk [vmem:[%s2855_s3 + $0x4c] sm:$0xf] %vm1389_vm1, %v1344_v8  ;;  %v1180_v11 = vld [vmem:[#allocation2 + $0x198] sm:$0xff]  ;;  %v1018_v12 = vadd.f32 %v890_v10, %v104_v7 }
 0x14b   :  { %v1248_v13 = vadd.f32 %v2666_v21, %v1180_v11  ;;  %v1149_v14 = vld [vmem:[#allocation2 + $0xa0] sm:$0xff]  ;;  %1114 = vst.msk [vmem:[#allocation2 + $0x1a0] sm:$0xff] %vm18_vm0, %v1049_v9 }
 0x14c   :  { %v1217_v15 = vadd.f32 %v2666_v21, %v1149_v14  ;;  %1083 = vst.msk [vmem:[#allocation2 + $0xa8] sm:$0xff] %vm18_vm0, %v1018_v12  ;;  %v800_v16 = vpop.f32.mrf.mxu2  ;;  %v139_v9 = vld [vmem:[#allocation2 + $0x1c0] sm:$0xff] }
 0x14d   :  { %v1312_v17 = vmax.f32 %v1248_v13, 0.0  ;;  %v969_v19 = vpop.f32.mrf.mxu3 }
 0x14e   :  { %v1281_v5 = vmax.f32 %v1217_v15, 0.0  ;;  %v970_v20 = vadd.f32 %v969_v19, %v800_v16  ;;  %v723_v22 = vpop.f32.mrf.mxu0  ;;  %v108_v15 = vld [vmem:[#allocation2 + $0xc8] sm:$0xff] }
 0x14f   :  { %v1376_v23 = vpack.c.bf16 %v1312_v17, %v1312_v17  ;;  %v892_v25 = vpop.f32.mrf.mxu1 }
 0x150   :  { %v1345_v26 = vpack.c.bf16 %v1281_v5, %v1281_v5  ;;  %v1050_v27 = vadd.f32 %v970_v20, %v136_v18  ;;  %v893_v28 = vadd.f32 %v892_v25, %v723_v22 }
 0x151   :  { %1441 = vst.msk [vmem:[%s2855_s3 + $0xcc] sm:$0xf] %vm1389_vm1, %v1376_v23 }
 0x152   :  { %1410 = vst.msk [vmem:[%s2855_s3 + $0x50] sm:$0xf] %vm1389_vm1, %v1345_v26  ;;  %v1181_v29 = vld [vmem:[#allocation2 + $0x1a0] sm:$0xff]  ;;  %v1019_v30 = vadd.f32 %v893_v28, %v105_v24 }
 0x153   :  { %v1249_v31 = vadd.f32 %v2666_v21, %v1181_v29  ;;  %v1150_v32 = vld [vmem:[#allocation2 + $0xa8] sm:$0xff]  ;;  %1115 = vst.msk [vmem:[#allocation2 + $0x1a8] sm:$0xff] %vm18_vm0, %v1050_v27 }
 0x154   :  { %v1218_v33 = vadd.f32 %v2666_v21, %v1150_v32  ;;  %1084 = vst.msk [vmem:[#allocation2 + $0xb0] sm:$0xff] %vm18_vm0, %v1019_v30  ;;  %v803_v34 = vpop.f32.mrf.mxu2  ;;  %v140_v27 = vld [vmem:[#allocation2 + $0x1c8] sm:$0xff] }
 0x155   :  { %v1313_v35 = vmax.f32 %v1249_v31, 0.0  ;;  %v972_v38 = vpop.f32.mrf.mxu3 }
 0x156   :  { %v1282_v39 = vmax.f32 %v1218_v33, 0.0  ;;  %v973_v40 = vadd.f32 %v972_v38, %v803_v34  ;;  %v725_v41 = vpop.f32.mrf.mxu0  ;;  %v109_v33 = vld [vmem:[#allocation2 + $0xd0] sm:$0xff] }
 0x157   :  { %v1377_v42 = vpack.c.bf16 %v1313_v35, %v1313_v35  ;;  %v894_v44 = vpop.f32.mrf.mxu1 }
 0x158   :  { %v1346_v45 = vpack.c.bf16 %v1282_v39, %v1282_v39  ;;  %v1051_v46 = vadd.f32 %v973_v40, %v137_v37  ;;  %v895_v47 = vadd.f32 %v894_v44, %v725_v41 }
 0x159   :  { %1442 = vst.msk [vmem:[%s2855_s3 + $0xd0] sm:$0xf] %vm1389_vm1, %v1377_v42 }
 0x15a   :  { %1411 = vst.msk [vmem:[%s2855_s3 + $0x54] sm:$0xf] %vm1389_vm1, %v1346_v45  ;;  %v1182_v48 = vld [vmem:[#allocation2 + $0x1a8] sm:$0xff]  ;;  %v1020_v49 = vadd.f32 %v895_v47, %v106_v43 }
 0x15b   :  { %v1250_v50 = vadd.f32 %v2666_v21, %v1182_v48  ;;  %v1151_v51 = vld [vmem:[#allocation2 + $0xb0] sm:$0xff]  ;;  %1116 = vst.msk [vmem:[#allocation2 + $0x1b0] sm:$0xff] %vm18_vm0, %v1051_v46 }
 0x15c   :  { %v1219_v52 = vadd.f32 %v2666_v21, %v1151_v51  ;;  %1085 = vst.msk [vmem:[#allocation2 + $0xb8] sm:$0xff] %vm18_vm0, %v1020_v49  ;;  %v805_v53 = vpop.f32.mrf.mxu2  ;;  %v141_v46 = vld [vmem:[#allocation2 + $0x1d0] sm:$0xff] }
 0x15d   :  { %v1314_v54 = vmax.f32 %v1250_v50, 0.0  ;;  %v974_v56 = vpop.f32.mrf.mxu3 }
 0x15e   :  { %v1283_v57 = vmax.f32 %v1219_v52, 0.0  ;;  %v975_v58 = vadd.f32 %v974_v56, %v805_v53  ;;  %v728_v59 = vpop.f32.mrf.mxu0  ;;  %v110_v52 = vld [vmem:[#allocation2 + $0xd8] sm:$0xff] }
 0x15f   :  { %v1378_v60 = vpack.c.bf16 %v1314_v54, %v1314_v54  ;;  %v897_v62 = vpop.f32.mrf.mxu1 }
 0x160   :  { %v1347_v63 = vpack.c.bf16 %v1283_v57, %v1283_v57  ;;  %v1052_v0 = vadd.f32 %v975_v58, %v138_v55  ;;  %v898_v1 = vadd.f32 %v897_v62, %v728_v59 }
 0x161   :  { %1443 = vst.msk [vmem:[%s2855_s3 + $0xd4] sm:$0xf] %vm1389_vm1, %v1378_v60 }
 0x162   :  { %1412 = vst.msk [vmem:[%s2855_s3 + $0x58] sm:$0xf] %vm1389_vm1, %v1347_v63  ;;  %v1183_v2 = vld [vmem:[#allocation2 + $0x1b0] sm:$0xff]  ;;  %v1021_v3 = vadd.f32 %v898_v1, %v107_v61 }
 0x163   :  { %v1251_v4 = vadd.f32 %v2666_v21, %v1183_v2  ;;  %v1152_v6 = vld [vmem:[#allocation2 + $0xb8] sm:$0xff]  ;;  %1117 = vst.msk [vmem:[#allocation2 + $0x1b8] sm:$0xff] %vm18_vm0, %v1052_v0 }
 0x164   :  { %v1220_v7 = vadd.f32 %v2666_v21, %v1152_v6  ;;  %1086 = vst.msk [vmem:[#allocation2 + $0xc0] sm:$0xff] %vm18_vm0, %v1021_v3  ;;  %v808_v36 = vpop.f32.mrf.mxu2  ;;  %v142_v0 = vld [vmem:[#allocation2 + $0x1d8] sm:$0xff] }
 0x165   :  { %v1315_v8 = vmax.f32 %v1251_v4, 0.0  ;;  %v977_v10 = vpop.f32.mrf.mxu3 }
 0x166   :  { %v1284_v11 = vmax.f32 %v1220_v7, 0.0  ;;  %v978_v12 = vadd.f32 %v977_v10, %v808_v36  ;;  %v730_v13 = vpop.f32.mrf.mxu0  ;;  %v111_v7 = vld [vmem:[#allocation2 + $0xe0] sm:$0xff] }
 0x167   :  { %v1379_v14 = vpack.c.bf16 %v1315_v8, %v1315_v8  ;;  %v899_v16 = vpop.f32.mrf.mxu1 }
 0x168   :  { %v1348_v17 = vpack.c.bf16 %v1284_v11, %v1284_v11  ;;  %v1053_v18 = vadd.f32 %v978_v12, %v139_v9  ;;  %v900_v19 = vadd.f32 %v899_v16, %v730_v13 }
 0x169   :  { %1444 = vst.msk [vmem:[%s2855_s3 + $0xd8] sm:$0xf] %vm1389_vm1, %v1379_v14 }
 0x16a   :  { %1413 = vst.msk [vmem:[%s2855_s3 + $0x5c] sm:$0xf] %vm1389_vm1, %v1348_v17  ;;  %v1184_v5 = vld [vmem:[#allocation2 + $0x1b8] sm:$0xff]  ;;  %v1022_v20 = vadd.f32 %v900_v19, %v108_v15 }
 0x16b   :  { %v1252_v22 = vadd.f32 %v2666_v21, %v1184_v5  ;;  %v1153_v23 = vld [vmem:[#allocation2 + $0xc0] sm:$0xff]  ;;  %1118 = vst.msk [vmem:[#allocation2 + $0x1c0] sm:$0xff] %vm18_vm0, %v1053_v18 }
 0x16c   :  { %v1221_v24 = vadd.f32 %v2666_v21, %v1153_v23  ;;  %1087 = vst.msk [vmem:[#allocation2 + $0xc8] sm:$0xff] %vm18_vm0, %v1022_v20  ;;  %v810_v25 = vpop.f32.mrf.mxu2  ;;  %v143_v18 = vld [vmem:[#allocation2 + $0x1e0] sm:$0xff] }
 0x16d   :  { %v1316_v26 = vmax.f32 %v1252_v22, 0.0  ;;  %v979_v28 = vpop.f32.mrf.mxu3 }
 0x16e   :  { %v1285_v29 = vmax.f32 %v1221_v24, 0.0  ;;  %v980_v30 = vadd.f32 %v979_v28, %v810_v25  ;;  %v733_v31 = vpop.f32.mrf.mxu0  ;;  %v112_v24 = vld [vmem:[#allocation2 + $0xe8] sm:$0xff] }
 0x16f   :  { %v1380_v32 = vpack.c.bf16 %v1316_v26, %v1316_v26  ;;  %v902_v34 = vpop.f32.mrf.mxu1 }
 0x170   :  { %v1349_v35 = vpack.c.bf16 %v1285_v29, %v1285_v29  ;;  %v1054_v37 = vadd.f32 %v980_v30, %v140_v27  ;;  %v903_v38 = vadd.f32 %v902_v34, %v733_v31 }
 0x171   :  { %1445 = vst.msk [vmem:[%s2855_s3 + $0xdc] sm:$0xf] %vm1389_vm1, %v1380_v32 }
 0x172   :  { %1414 = vst.msk [vmem:[%s2855_s3 + $0x60] sm:$0xf] %vm1389_vm1, %v1349_v35  ;;  %v1185_v39 = vld [vmem:[#allocation2 + $0x1c0] sm:$0xff]  ;;  %v1023_v40 = vadd.f32 %v903_v38, %v109_v33 }
 0x173   :  { %v1253_v41 = vadd.f32 %v2666_v21, %v1185_v39  ;;  %v1154_v42 = vld [vmem:[#allocation2 + $0xc8] sm:$0xff]  ;;  %1119 = vst.msk [vmem:[#allocation2 + $0x1c8] sm:$0xff] %vm18_vm0, %v1054_v37 }
 0x174   :  { %v1222_v43 = vadd.f32 %v2666_v21, %v1154_v42  ;;  %1088 = vst.msk [vmem:[#allocation2 + $0xd0] sm:$0xff] %vm18_vm0, %v1023_v40  ;;  %v813_v44 = vpop.f32.mrf.mxu2  ;;  %v144_v37 = vld [vmem:[#allocation2 + $0x1e8] sm:$0xff] }
 0x175   :  { %v1317_v45 = vmax.f32 %v1253_v41, 0.0  ;;  %v982_v47 = vpop.f32.mrf.mxu3 }
 0x176   :  { %v1286_v48 = vmax.f32 %v1222_v43, 0.0  ;;  %v983_v49 = vadd.f32 %v982_v47, %v813_v44  ;;  %v735_v50 = vpop.f32.mrf.mxu0  ;;  %v113_v43 = vld [vmem:[#allocation2 + $0xf0] sm:$0xff] }
 0x177   :  { %v1381_v51 = vpack.c.bf16 %v1317_v45, %v1317_v45  ;;  %v904_v53 = vpop.f32.mrf.mxu1 }
 0x178   :  { %v1350_v54 = vpack.c.bf16 %v1286_v48, %v1286_v48  ;;  %v1055_v55 = vadd.f32 %v983_v49, %v141_v46  ;;  %v905_v56 = vadd.f32 %v904_v53, %v735_v50 }
 0x179   :  { %1446 = vst.msk [vmem:[%s2855_s3 + $0xe0] sm:$0xf] %vm1389_vm1, %v1381_v51 }
 0x17a   :  { %1415 = vst.msk [vmem:[%s2855_s3 + $0x64] sm:$0xf] %vm1389_vm1, %v1350_v54  ;;  %v1186_v57 = vld [vmem:[#allocation2 + $0x1c8] sm:$0xff]  ;;  %v1024_v58 = vadd.f32 %v905_v56, %v110_v52 }
 0x17b   :  { %v1254_v59 = vadd.f32 %v2666_v21, %v1186_v57  ;;  %v1155_v60 = vld [vmem:[#allocation2 + $0xd0] sm:$0xff]  ;;  %1120 = vst.msk [vmem:[#allocation2 + $0x1d0] sm:$0xff] %vm18_vm0, %v1055_v55 }
 0x17c   :  { %v1223_v61 = vadd.f32 %v2666_v21, %v1155_v60  ;;  %1089 = vst.msk [vmem:[#allocation2 + $0xd8] sm:$0xff] %vm18_vm0, %v1024_v58  ;;  %v815_v62 = vpop.f32.mrf.mxu2  ;;  %v145_v55 = vld [vmem:[#allocation2 + $0x1f0] sm:$0xff] }
 0x17d   :  { %v1318_v63 = vmax.f32 %v1254_v59, 0.0  ;;  %v984_v1 = vpop.f32.mrf.mxu3 }
 0x17e   :  { %v1287_v2 = vmax.f32 %v1223_v61, 0.0  ;;  %v985_v3 = vadd.f32 %v984_v1, %v815_v62  ;;  %v738_v4 = vpop.f32.mrf.mxu0  ;;  %v114_v61 = vld [vmem:[#allocation2 + $0xf8] sm:$0xff] }
 0x17f   :  { %v1382_v6 = vpack.c.bf16 %v1318_v63, %v1318_v63  ;;  %v907_v36 = vpop.f32.mrf.mxu1 }
 0x180   :  { %v1351_v8 = vpack.c.bf16 %v1287_v2, %v1287_v2  ;;  %v1056_v9 = vadd.f32 %v985_v3, %v142_v0  ;;  %v908_v10 = vadd.f32 %v907_v36, %v738_v4 }
 0x181   :  { %1447 = vst.msk [vmem:[%s2855_s3 + $0xe4] sm:$0xf] %vm1389_vm1, %v1382_v6 }
 0x182   :  { %1416 = vst.msk [vmem:[%s2855_s3 + $0x68] sm:$0xf] %vm1389_vm1, %v1351_v8  ;;  %v1187_v11 = vld [vmem:[#allocation2 + $0x1d0] sm:$0xff]  ;;  %v1025_v12 = vadd.f32 %v908_v10, %v111_v7 }
 0x183   :  { %v1255_v13 = vadd.f32 %v2666_v21, %v1187_v11  ;;  %v1156_v14 = vld [vmem:[#allocation2 + $0xd8] sm:$0xff]  ;;  %1121 = vst.msk [vmem:[#allocation2 + $0x1d8] sm:$0xff] %vm18_vm0, %v1056_v9 }
 0x184   :  { %v1224_v15 = vadd.f32 %v2666_v21, %v1156_v14  ;;  %1090 = vst.msk [vmem:[#allocation2 + $0xe0] sm:$0xff] %vm18_vm0, %v1025_v12  ;;  %v818_v16 = vpop.f32.mrf.mxu2  ;;  %v146_v9 = vld [vmem:[#allocation2 + $0x1f8] sm:$0xff] }
 0x185   :  { %v1319_v17 = vmax.f32 %v1255_v13, 0.0  ;;  %v987_v19 = vpop.f32.mrf.mxu3 }
 0x186   :  { %v1288_v5 = vmax.f32 %v1224_v15, 0.0  ;;  %v988_v20 = vadd.f32 %v987_v19, %v818_v16  ;;  %v740_v22 = vpop.f32.mrf.mxu0 }
 0x187   :  { %v1383_v23 = vpack.c.bf16 %v1319_v17, %v1319_v17  ;;  %v909_v25 = vpop.f32.mrf.mxu1 }
 0x188   :  { %v1352_v26 = vpack.c.bf16 %v1288_v5, %v1288_v5  ;;  %v1057_v27 = vadd.f32 %v988_v20, %v143_v18  ;;  %v910_v28 = vadd.f32 %v909_v25, %v740_v22 }
 0x189   :  { %1448 = vst.msk [vmem:[%s2855_s3 + $0xe8] sm:$0xf] %vm1389_vm1, %v1383_v23 }
 0x18a   :  { %1417 = vst.msk [vmem:[%s2855_s3 + $0x6c] sm:$0xf] %vm1389_vm1, %v1352_v26  ;;  %v1188_v29 = vld [vmem:[#allocation2 + $0x1d8] sm:$0xff]  ;;  %v1026_v30 = vadd.f32 %v910_v28, %v112_v24 }
 0x18b   :  { %v1256_v31 = vadd.f32 %v2666_v21, %v1188_v29  ;;  %v1157_v32 = vld [vmem:[#allocation2 + $0xe0] sm:$0xff]  ;;  %1122 = vst.msk [vmem:[#allocation2 + $0x1e0] sm:$0xff] %vm18_vm0, %v1057_v27 }
 0x18c   :  { %v1225_v33 = vadd.f32 %v2666_v21, %v1157_v32  ;;  %1091 = vst.msk [vmem:[#allocation2 + $0xe8] sm:$0xff] %vm18_vm0, %v1026_v30  ;;  %v820_v34 = vpop.f32.mrf.mxu2 }
 0x18d   :  { %v1320_v35 = vmax.f32 %v1256_v31, 0.0  ;;  %v989_v38 = vpop.f32.mrf.mxu3 }
 0x18e   :  { %v1289_v39 = vmax.f32 %v1225_v33, 0.0  ;;  %v990_v40 = vadd.f32 %v989_v38, %v820_v34  ;;  %v743_v41 = vpop.f32.mrf.mxu0 }
 0x18f   :  { %v1384_v42 = vpack.c.bf16 %v1320_v35, %v1320_v35  ;;  %v912_v44 = vpop.f32.mrf.mxu1 }
 0x190   :  { %v1353_v45 = vpack.c.bf16 %v1289_v39, %v1289_v39  ;;  %v1058_v46 = vadd.f32 %v990_v40, %v144_v37  ;;  %v913_v47 = vadd.f32 %v912_v44, %v743_v41 }
 0x191   :  { %1449 = vst.msk [vmem:[%s2855_s3 + $0xec] sm:$0xf] %vm1389_vm1, %v1384_v42 }
 0x192   :  { %1418 = vst.msk [vmem:[%s2855_s3 + $0x70] sm:$0xf] %vm1389_vm1, %v1353_v45  ;;  %v1189_v48 = vld [vmem:[#allocation2 + $0x1e0] sm:$0xff]  ;;  %v1027_v49 = vadd.f32 %v913_v47, %v113_v43 }
 0x193   :  { %v1257_v50 = vadd.f32 %v2666_v21, %v1189_v48  ;;  %v1158_v51 = vld [vmem:[#allocation2 + $0xe8] sm:$0xff]  ;;  %1123 = vst.msk [vmem:[#allocation2 + $0x1e8] sm:$0xff] %vm18_vm0, %v1058_v46 }
 0x194   :  { %v1226_v52 = vadd.f32 %v2666_v21, %v1158_v51  ;;  %1092 = vst.msk [vmem:[#allocation2 + $0xf0] sm:$0xff] %vm18_vm0, %v1027_v49  ;;  %v823_v53 = vpop.f32.mrf.mxu2 }
 0x195   :  { %v1321_v54 = vmax.f32 %v1257_v50, 0.0  ;;  %v992_v56 = vpop.f32.mrf.mxu3 }
 0x196   :  { %v1290_v57 = vmax.f32 %v1226_v52, 0.0  ;;  %v993_v58 = vadd.f32 %v992_v56, %v823_v53  ;;  %v745_v59 = vpop.f32.mrf.mxu0 }
 0x197   :  { %v1385_v60 = vpack.c.bf16 %v1321_v54, %v1321_v54  ;;  %v914_v62 = vpop.f32.mrf.mxu1 }
 0x198   :  { %v1354_v63 = vpack.c.bf16 %v1290_v57, %v1290_v57  ;;  %v1059_v0 = vadd.f32 %v993_v58, %v145_v55  ;;  %v915_v1 = vadd.f32 %v914_v62, %v745_v59 }
 0x199   :  { %1450 = vst.msk [vmem:[%s2855_s3 + $0xf0] sm:$0xf] %vm1389_vm1, %v1385_v60 }
 0x19a   :  { %1419 = vst.msk [vmem:[%s2855_s3 + $0x74] sm:$0xf] %vm1389_vm1, %v1354_v63  ;;  %v1190_v2 = vld [vmem:[#allocation2 + $0x1e8] sm:$0xff]  ;;  %v1028_v3 = vadd.f32 %v915_v1, %v114_v61 }
 0x19b   :  { %v1258_v4 = vadd.f32 %v2666_v21, %v1190_v2  ;;  %v1159_v6 = vld [vmem:[#allocation2 + $0xf0] sm:$0xff]  ;;  %1124 = vst.msk [vmem:[#allocation2 + $0x1f0] sm:$0xff] %vm18_vm0, %v1059_v0 }
 0x19c   :  { %v1227_v7 = vadd.f32 %v2666_v21, %v1159_v6  ;;  %1093 = vst.msk [vmem:[#allocation2 + $0xf8] sm:$0xff] %vm18_vm0, %v1028_v3  ;;  %v825_v36 = vpop.f32.mrf.mxu2 }
 0x19d   :  { %v1322_v8 = vmax.f32 %v1258_v4, 0.0  ;;  %v994_v10 = vpop.f32.mrf.mxu3 }
 0x19e   :  { %v1291_v11 = vmax.f32 %v1227_v7, 0.0  ;;  %v995_v12 = vadd.f32 %v994_v10, %v825_v36 }
 0x19f   :  { %v1386_v13 = vpack.c.bf16 %v1322_v8, %v1322_v8 }
 0x1a0   :  { %v1355_v14 = vpack.c.bf16 %v1291_v11, %v1291_v11  ;;  %v1060_v15 = vadd.f32 %v995_v12, %v146_v9 }
 0x1a1   :  { %1451 = vst.msk [vmem:[%s2855_s3 + $0xf4] sm:$0xf] %vm1389_vm1, %v1386_v13 }
 0x1a2   :  { %1420 = vst.msk [vmem:[%s2855_s3 + $0x78] sm:$0xf] %vm1389_vm1, %v1355_v14  ;;  %v1191_v16 = vld [vmem:[#allocation2 + $0x1f0] sm:$0xff] }
 0x1a3   :  { %v1259_v17 = vadd.f32 %v2666_v21, %v1191_v16  ;;  %v1160_v18 = vld [vmem:[#allocation2 + $0xf8] sm:$0xff]  ;;  %1125 = vst.msk [vmem:[#allocation2 + $0x1f8] sm:$0xff] %vm18_vm0, %v1060_v15 }
 0x1a4   :  { %v1228_v19 = vadd.f32 %v2666_v21, %v1160_v18 }
 0x1a5   :  { %v1323_v5 = vmax.f32 %v1259_v17, 0.0 }
 0x1a6   :  { %v1292_v20 = vmax.f32 %v1228_v19, 0.0 }
 0x1a7   :  { %v1387_v22 = vpack.c.bf16 %v1323_v5, %v1323_v5 }
 0x1a8   :  { %v1356_v23 = vpack.c.bf16 %v1292_v20, %v1292_v20 }
 0x1a9   :  { %1452 = vst.msk [vmem:[%s2855_s3 + $0xf8] sm:$0xf] %vm1389_vm1, %v1387_v22 }
 0x1aa   :  { %1421 = vst.msk [vmem:[%s2855_s3 + $0x7c] sm:$0xf] %vm1389_vm1, %v1356_v23  ;;  %v1192_v24 = vld [vmem:[#allocation2 + $0x1f8] sm:$0xff] }
 0x1ab   :  { %v1260_v25 = vadd.f32 %v2666_v21, %v1192_v24 }
 0x1ad   :  { %v1324_v26 = vmax.f32 %v1260_v25, 0.0 }
 0x1af   :  { %v1388_v27 = vpack.c.bf16 %v1324_v26, %v1324_v26 }
 0x1b1   :  { %1453 = vst.msk [vmem:[%s2855_s3 + $0xfc] sm:$0xf] %vm1389_vm1, %v1388_v27 }

</bundles_post_ra>
